<compile_context>
chip_gen: v7x
topology: tpu7x:2x2x1
jax: 0.10.0
libtpu: 0.0.40
codegen_flags: <defaults>
</compile_context>

<pallas_src>
import math

import jax
import jax.numpy as jnp
from jax.experimental import pallas as pl
from jax.experimental.pallas import tpu as pltpu

# ----------------------------- model dims -----------------------------------
SAMPLE_RATE = 22050
N_FFT = 400
HOP = 200
N_MELS = 128
N_MFCC = 13
N_FRAMES = 551                 # fc0 expects 13 * 551 inputs
WAV_LEN = 110000               # 1 + WAV_LEN // HOP == 551 frames (center=True)
D_IN = N_MFCC * N_FRAMES       # 7163
HIDDEN = 80
N_OUT = 572
TOP_DB = 80.0                  # torchaudio.transforms.MFCC hardcodes this

# Lane-aligned padded dims used by the Pallas kernel.
K_PAD = 7168                   # 56 * 128  (fc0 reduction dim)
H_PAD = 128                    # hidden 80 -> one full lane group
N_OUT_PAD = 640                # 5 * 128   (lane-dense output stores)


def _round_up(x, m):
    return (x + m - 1) // m * m


# --------------------- chip-adaptive batch tiling ----------------------------
_TILING_CACHE = None


def _chip_tiling():
    """Return (TB_MAX, vmem_limit_bytes) based on the chip's physical VMEM."""
    global _TILING_CACHE
    if _TILING_CACHE is None:
        try:
            cap = pltpu.get_tpu_info().vmem_capacity_bytes
        except Exception:
            cap = 64 * 1024 * 1024                 # conservative (v7x-sized)
        if cap >= 96 * 1024 * 1024:                # v5e / v6e: 128 MiB physical
            _TILING_CACHE = (1024, 56 * 1024 * 1024)
        else:                                      # v7x: 64 MiB per TensorCore
            _TILING_CACHE = (512, 40 * 1024 * 1024)
    return _TILING_CACHE


def _batch_tiling(batch):
    """Pick (TB, padded_batch, vmem_limit). TB is a multiple of 16 (bf16
    sublane packing) and is capped so the grid has >= 2 steps when possible,
    letting v7x's two TensorCores split the 'parallel' batch axis."""
    tb_max, vmem_bytes = _chip_tiling()
    tb = min(tb_max, _round_up(max(1, -(-batch // 2)), 16))
    bp = _round_up(batch, tb)
    return tb, bp, vmem_bytes


# ------------------------- MFCC front-end (plain JAX glue) -------------------
def _hz_to_mel(f):
    return 2595.0 * jnp.log10(1.0 + f / 700.0)


def _mel_to_hz(m):
    return 700.0 * (10.0 ** (m / 2595.0) - 1.0)


def _mel_filterbank(n_freqs, f_min, f_max, n_mels, sample_rate):
    # torchaudio.functional.melscale_fbanks(norm=None, mel_scale="htk")
    all_freqs = jnp.linspace(0.0, sample_rate / 2.0, n_freqs)
    m_min = _hz_to_mel(jnp.asarray(f_min))
    m_max = _hz_to_mel(jnp.asarray(f_max))
    m_pts = jnp.linspace(m_min, m_max, n_mels + 2)
    f_pts = _mel_to_hz(m_pts)
    f_diff = f_pts[1:] - f_pts[:-1]                       # (n_mels + 1,)
    slopes = f_pts[None, :] - all_freqs[:, None]          # (n_freqs, n_mels + 2)
    down = -slopes[:, :-2] / f_diff[:-1]
    up = slopes[:, 2:] / f_diff[1:]
    return jnp.maximum(0.0, jnp.minimum(down, up))        # (n_freqs, n_mels)


def _dct_matrix(n_mfcc, n_mels):
    # torchaudio.functional.create_dct(norm="ortho") -> (n_mels, n_mfcc)
    n = jnp.arange(n_mels, dtype=jnp.float32)
    k = jnp.arange(n_mfcc, dtype=jnp.float32)[:, None]
    dct = jnp.cos(math.pi / n_mels * (n + 0.5) * k)       # (n_mfcc, n_mels)
    dct = dct.at[0].multiply(1.0 / math.sqrt(2.0))
    dct = dct * math.sqrt(2.0 / n_mels)
    return dct.T


def mfcc_jax(wav):
    """torchaudio.transforms.MFCC(sample_rate=22050, n_mfcc=13) equivalent.

    wav: (B, L) float32 -> (B, n_mfcc, frames) float32
    """
    pad = N_FFT // 2
    padded = jnp.pad(wav, ((0, 0), (pad, pad)), mode="reflect")
    n_frames = 1 + wav.shape[1] // HOP
    idx = jnp.arange(n_frames)[:, None] * HOP + jnp.arange(N_FFT)[None, :]
    frames = padded[:, idx]                                # (B, F, n_fft)
    n = jnp.arange(N_FFT, dtype=jnp.float32)
    window = 0.5 * (1.0 - jnp.cos(2.0 * math.pi * n / N_FFT))  # periodic hann
    spec = jnp.abs(jnp.fft.rfft(frames * window, axis=-1)) ** 2  # power=2.0
    mel_fb = _mel_filterbank(N_FFT // 2 + 1, 0.0, SAMPLE_RATE / 2.0,
                             N_MELS, SAMPLE_RATE)
    mel = spec @ mel_fb                                    # (B, F, n_mels)
    # AmplitudeToDB("power", top_db=80): 10*log10(max(x,1e-10)), ref=1, then
    # clamp per batch item to (max - 80 dB) -- matches torchaudio MFCC.
    log_mel = 10.0 * jnp.log10(jnp.maximum(mel, 1e-10))
    log_mel = jnp.maximum(
        log_mel, jnp.max(log_mel, axis=(1, 2), keepdims=True) - TOP_DB)
    mfcc = log_mel @ _dct_matrix(N_MFCC, N_MELS)           # (B, F, n_mfcc)
    return jnp.transpose(mfcc, (0, 2, 1))                  # (B, n_mfcc, F)


# ------------------------- padded operand preparation ------------------------
def _pad_params(params):
    """Lane-aligned zero padding + bf16 casts of the weights (wrapper glue).

    fc1 weight is pre-merged: rows [0:80] act on relu(h), rows [128:208] on
    relu(-h); padded rows correspond to zero hidden columns so they add 0."""
    w0, b0, w1, b1 = params["w0"], params["b0"], params["w1"], params["b1"]
    w0p = jnp.pad(w0, ((0, K_PAD - D_IN), (0, H_PAD - HIDDEN))).astype(jnp.bfloat16)
    b0p = jnp.pad(b0.reshape(1, HIDDEN), ((0, 0), (0, H_PAD - HIDDEN)))
    w1p = jnp.zeros((2 * H_PAD, N_OUT_PAD), jnp.float32)
    w1p = w1p.at[:HIDDEN, :N_OUT].set(w1[:HIDDEN])
    w1p = w1p.at[H_PAD:H_PAD + HIDDEN, :N_OUT].set(w1[HIDDEN:])
    w1p = w1p.astype(jnp.bfloat16)
    b1p = jnp.pad(b1.reshape(1, N_OUT), ((0, 0), (0, N_OUT_PAD - N_OUT)))
    return w0p, b0p, w1p, b1p


def _padded_features(wav, bp):
    """Fused producer of the padded bf16 activation slab: reshape + 1e-6 +
    K pad (7163->7168) + batch pad + bf16 cast in one pass (fuses with the
    DCT epilogue under XLA -- no extra (Bp,7168) HBM round trip)."""
    batch = wav.shape[0]
    feats = mfcc_jax(wav)                                  # (B, 13, 551) f32
    flat = feats.reshape(batch, D_IN) + 1e-6
    return jnp.pad(flat, ((0, bp - batch), (0, K_PAD - D_IN))).astype(jnp.bfloat16)


# ----------------------------- Pallas kernel ---------------------------------
def s2p_kernel(x_ref, w0_ref, b0_ref, w1_ref, b1_ref, o_ref):
    # x_ref: (TB, K_PAD) bf16; padded K columns / w0 rows are zero -> add 0.
    h = jnp.dot(x_ref[...], w0_ref[...], preferred_element_type=jnp.float32)
    h = h + b0_ref[...]                                    # (TB, H_PAD) f32
    # cat(relu(h), relu(-h)) is lane-aligned (two 128-wide halves) -> one
    # fused (TB,256)@(256,640) MXU pass against the pre-merged fc1 weight.
    h_cat = jnp.concatenate(
        [jnp.maximum(h, 0.0), jnp.maximum(-h, 0.0)], axis=-1).astype(jnp.bfloat16)
    acc = jnp.dot(h_cat, w1_ref[...], preferred_element_type=jnp.float32)
    o_ref[...] = (acc + b1_ref[...]).astype(o_ref.dtype)


def speech2phone_head(x_pad, padded_params, tb, vmem_bytes):
    """x_pad: (Bp, K_PAD) bf16, Bp a multiple of tb."""
    bp = x_pad.shape[0]
    w0p, b0p, w1p, b1p = padded_params
    return pl.pallas_call(
        s2p_kernel,
        out_shape=jax.ShapeDtypeStruct((bp, N_OUT_PAD), jnp.float32),
        grid=(bp // tb,),
        in_specs=[
            pl.BlockSpec((tb, K_PAD), lambda i: (i, 0)),             # batch-tiled x
            pl.BlockSpec((K_PAD, H_PAD), lambda i: (0, 0)),          # resident w0
            pl.BlockSpec((1, H_PAD), lambda i: (0, 0)),              # resident b0
            pl.BlockSpec((2 * H_PAD, N_OUT_PAD), lambda i: (0, 0)),  # resident merged w1
            pl.BlockSpec((1, N_OUT_PAD), lambda i: (0, 0)),          # resident b1
        ],
        out_specs=pl.BlockSpec((tb, N_OUT_PAD), lambda i: (i, 0)),
        compiler_params=pltpu.CompilerParams(
            dimension_semantics=("parallel",),    # batch tiles split across TCs
            vmem_limit_bytes=vmem_bytes),
    )(x_pad, w0p, b0p, w1p, b1p)


def speech2phone_forward(wav, params):
    # Dropout(p=0.83) is train-only -> identity at inference.
    batch = wav.shape[0]
    tb, bp, vmem_bytes = _batch_tiling(batch)
    x_pad = _padded_features(wav, bp)                      # (Bp, 7168) bf16
    out = speech2phone_head(x_pad, _pad_params(params), tb, vmem_bytes)
    return out[:batch, :N_OUT]


# ------------------------- plain-JAX reference (same math) -------------------
def speech2phone_reference(wav, params):
    """Same bf16 operands / f32 accumulation as the kernel, in plain jnp."""
    batch = wav.shape[0]
    _, bp, _ = _batch_tiling(batch)
    x_pad = _padded_features(wav, bp)
    w0p, b0p, w1p, b1p = _pad_params(params)
    h = jnp.dot(x_pad, w0p, preferred_element_type=jnp.float32) + b0p
    h_cat = jnp.concatenate(
        [jnp.maximum(h, 0.0), jnp.maximum(-h, 0.0)], axis=-1).astype(jnp.bfloat16)
    out = jnp.dot(h_cat, w1p, preferred_element_type=jnp.float32) + b1p
    return out[:batch, :N_OUT]


def init_params(key):
    k0, k1, k2, k3 = jax.random.split(key, 4)
    # nn.Linear(13*551, 80) and nn.Linear(160, 572); stored as (in, out).
    w0 = jax.random.normal(k0, (D_IN, HIDDEN), jnp.float32) * 0.01
    b0 = jax.random.normal(k1, (1, HIDDEN), jnp.float32) * 0.01
    w1 = jax.random.normal(k2, (2 * HIDDEN, N_OUT), jnp.float32) * 0.01
    b1 = jax.random.normal(k3, (1, N_OUT), jnp.float32) * 0.01
    return {"w0": w0, "b0": b0, "w1": w1, "b1": b1}


if __name__ == "__main__":
    key = jax.random.PRNGKey(0)
    k_wav, k_params = jax.random.split(key)
    B = 2
    wav = jax.random.normal(k_wav, (B, WAV_LEN), jnp.float32)  # raw waveform
    params = init_params(k_params)

    out = jax.block_until_ready(jax.jit(speech2phone_forward)(wav, params))
    assert out.shape == (B, N_OUT) and out.dtype == jnp.float32
    assert bool(jnp.isfinite(out).all())

    # Tolerance check of the Pallas head against a plain-JAX reference built
    # from the same bf16 operands (kernel-correctness check per review).
    ref = jax.block_until_ready(jax.jit(speech2phone_reference)(wav, params))
    assert bool(jnp.allclose(out, ref, rtol=2e-2, atol=1e-2))

    print("KERNEL_OK")
</pallas_src>

<mosaic_0001>
module attributes {stable_mosaic.version = 11 : i64} {
  func.func private @main(%arg0: i32) attributes {dimension_semantics = [#tpu.dimension_semantics<core_parallel>], iteration_bounds = array<i64: 2>, tpu.core_type = #tpu.core_type<sc_scalar_subcore>, window_params = []} {
    return
  }
}

module attributes {stable_mosaic.version = 11 : i64} {
  func.func private @main(%arg0: i32) attributes {dimension_semantics = [#tpu.dimension_semantics<core_parallel>], iteration_bounds = array<i64: 2>, tpu.core_type = #tpu.core_type<sc_scalar_subcore>, window_params = []} {
    return
  }
}

module attributes {stable_mosaic.version = 11 : i64} {
  func.func @s2p_kernel(%arg0: i32, %arg1: memref<16x7168xbf16, #tpu.memory_space<vmem>>, %arg2: memref<7168x128xbf16, #tpu.memory_space<vmem>>, %arg3: memref<1x128xf32, #tpu.memory_space<vmem>>, %arg4: memref<256x640xbf16, #tpu.memory_space<vmem>>, %arg5: memref<1x640xf32, #tpu.memory_space<vmem>>, %arg6: memref<16x640xf32, #tpu.memory_space<vmem>>) attributes {dimension_semantics = [#tpu.dimension_semantics<parallel>], iteration_bounds = array<i64: 1>, scalar_prefetch = 0 : i64, scratch_operands = 0 : i64, tpu.core_type = #tpu.core_type<tc>, window_params = [{transform_indices = @transform_0, window_bounds = array<i64: 16, 7168>}, {pipeline_mode = #tpu.pipeline_mode<synchronous>, transform_indices = @transform_1, window_bounds = array<i64: 7168, 128>}, {pipeline_mode = #tpu.pipeline_mode<synchronous>, transform_indices = @transform_2, window_bounds = array<i64: 1, 128>}, {pipeline_mode = #tpu.pipeline_mode<synchronous>, transform_indices = @transform_3, window_bounds = array<i64: 256, 640>}, {pipeline_mode = #tpu.pipeline_mode<synchronous>, transform_indices = @transform_4, window_bounds = array<i64: 1, 640>}, {transform_indices = @transform_5, window_bounds = array<i64: 16, 640>}]} {
    %c0 = arith.constant 0 : index
    %c0_0 = arith.constant 0 : index
    %0 = vector.load %arg1[%c0, %c0_0] : memref<16x7168xbf16, #tpu.memory_space<vmem>>, vector<16x7168xbf16>
    %c0_1 = arith.constant 0 : index
    %c0_2 = arith.constant 0 : index
    %1 = vector.load %arg2[%c0_1, %c0_2] : memref<7168x128xbf16, #tpu.memory_space<vmem>>, vector<7168x128xbf16>
    %cst = arith.constant dense<0.000000e+00> : vector<16x128xf32>
    %2 = tpu.matmul %0, %1, %cst {dimension_numbers = #tpu.dot_dimension_numbers<[1], [0], [0], [1], [0, 0, 1, 1], [], []>} : vector<16x7168xbf16>, vector<7168x128xbf16>, vector<16x128xf32> -> vector<16x128xf32>
    %c0_3 = arith.constant 0 : index
    %c0_4 = arith.constant 0 : index
    %3 = vector.load %arg3[%c0_3, %c0_4] : memref<1x128xf32, #tpu.memory_space<vmem>>, vector<1x128xf32>
    %4 = vector.broadcast %3 : vector<1x128xf32> to vector<16x128xf32>
    %5 = arith.addf %2, %4 : vector<16x128xf32>
    %cst_5 = arith.constant 0.000000e+00 : f32
    %6 = vector.broadcast %cst_5 : f32 to vector<16x128xf32>
    %7 = arith.maximumf %5, %6 : vector<16x128xf32>
    %cst_6 = arith.constant 0.000000e+00 : f32
    %8 = vector.broadcast %cst_6 : f32 to vector<16x128xf32>
    %9 = arith.subf %8, %5 : vector<16x128xf32>
    %cst_7 = arith.constant 0.000000e+00 : f32
    %10 = vector.broadcast %cst_7 : f32 to vector<16x128xf32>
    %11 = arith.maximumf %9, %10 : vector<16x128xf32>
    %12 = tpu.concatenate %7, %11 in 1 : vector<16x128xf32>, vector<16x128xf32> -> vector<16x256xf32>
    %13 = arith.truncf %12 : vector<16x256xf32> to vector<16x256xbf16>
    %c0_8 = arith.constant 0 : index
    %c0_9 = arith.constant 0 : index
    %14 = vector.load %arg4[%c0_8, %c0_9] : memref<256x640xbf16, #tpu.memory_space<vmem>>, vector<256x640xbf16>
    %cst_10 = arith.constant dense<0.000000e+00> : vector<16x640xf32>
    %15 = tpu.matmul %13, %14, %cst_10 {dimension_numbers = #tpu.dot_dimension_numbers<[1], [0], [0], [1], [0, 0, 1, 1], [], []>} : vector<16x256xbf16>, vector<256x640xbf16>, vector<16x640xf32> -> vector<16x640xf32>
    %c0_11 = arith.constant 0 : index
    %c0_12 = arith.constant 0 : index
    %16 = vector.load %arg5[%c0_11, %c0_12] : memref<1x640xf32, #tpu.memory_space<vmem>>, vector<1x640xf32>
    %17 = vector.broadcast %16 : vector<1x640xf32> to vector<16x640xf32>
    %18 = arith.addf %15, %17 : vector<16x640xf32>
    %c0_13 = arith.constant 0 : index
    %c0_14 = arith.constant 0 : index
    %19 = vector.load %arg6[%c0_13, %c0_14] : memref<16x640xf32, #tpu.memory_space<vmem>>, vector<16x640xf32>
    tpu.vector_store %arg6[%c0_13, %c0_14], %18 {strides = array<i32>} : memref<16x640xf32, #tpu.memory_space<vmem>>, vector<16x640xf32>,
    return
  }
  func.func @transform_0(%arg0: i32) -> (i32, i32) {
    %c0_i32 = arith.constant 0 : i32
    %c0_i32_0 = arith.constant 0 : i32
    return %arg0, %c0_i32 : i32, i32
  }
  func.func @transform_1(%arg0: i32) -> (i32, i32) {
    %c0_i32 = arith.constant 0 : i32
    %c0_i32_0 = arith.constant 0 : i32
    %c0_i32_1 = arith.constant 0 : i32
    return %c0_i32, %c0_i32_0 : i32, i32
  }
  func.func @transform_2(%arg0: i32) -> (i32, i32) {
    %c0_i32 = arith.constant 0 : i32
    %c0_i32_0 = arith.constant 0 : i32
    %c0_i32_1 = arith.constant 0 : i32
    return %c0_i32, %c0_i32_0 : i32, i32
  }
  func.func @transform_3(%arg0: i32) -> (i32, i32) {
    %c0_i32 = arith.constant 0 : i32
    %c0_i32_0 = arith.constant 0 : i32
    %c0_i32_1 = arith.constant 0 : i32
    return %c0_i32, %c0_i32_0 : i32, i32
  }
  func.func @transform_4(%arg0: i32) -> (i32, i32) {
    %c0_i32 = arith.constant 0 : i32
    %c0_i32_0 = arith.constant 0 : i32
    %c0_i32_1 = arith.constant 0 : i32
    return %c0_i32, %c0_i32_0 : i32, i32
  }
  func.func @transform_5(%arg0: i32) -> (i32, i32) {
    %c0_i32 = arith.constant 0 : i32
    %c0_i32_0 = arith.constant 0 : i32
    return %arg0, %c0_i32 : i32, i32
  }
}

</mosaic_0001>

<bundles_post_ra>
// kernel: custom-call
= control target key start
LH: loop header
LB: loop body
LE: loop exit
PB: predicated region body
PF: predicated region fallthrough
CT: control target
= control target key end

     0   :  { %s6_s0 = inlined_call_operand.vmem [shape: f32[2,110400], index: 0, kind: output, shape index: {}]  }

// kernel: reverse
= control target key start
LH: loop header
LB: loop body
LE: loop exit
PB: predicated region body
PF: predicated region fallthrough
CT: control target
= control target key end

     0   :  { %v2_v0 = vlaneseq  ;;  %s311_s0 = inlined_call_operand.vmem [shape: f32[2,256], index: 0, kind: input, shape index: {}]   ;;  %s312_s1 = inlined_call_operand.vmem [shape: f32[2,256], index: 1, kind: output, shape index: {}]  }
   0x2   :  { %v3_v1 = vsub.s32 127, %v2_v0 }
   0x4   :  { %4 = vset.pattern.permute.xlu0 %v3_v1 }
   0x5   :  { %s271_s6 = smov 0   ;;  %s273_s7 = smov 0  }
   0x6   :  { %s275_s8 = smov 0  }
   0x7 LB: > { %s201_s9 = sadd.s32 4294967295, %s259_s8   ;;  %s19_s10 = sadd.s32 1, %s255_s7  ;;  %s259_s8 = sphi %s275_s8, %s10_s8   ;;  %s255_s7 = sphi %s273_s7, %s314_s7   ;;  %s251_s6 = sphi %s271_s6, %s313_s6  }
   0x8   : > { %p20_p0 = scmp.ge.s32.totalorder %s19_s10, 2  ;;  %p203_p1 = scmp.ge.s32.totalorder %s259_s8, 2 }
   0x9   : > { %s38_s11 = sand.u32 (!%p203_p1), 1, %s259_s8   ;;  %s41_s12 = ssub.s32 (!%p203_p1), 1, %s255_s7 }
   0xa   : > { %s316_s10 = smov (%p20_p0, %s19_s10), 0  ;;  %36 = sbr.rel (%p203_p1) target bundleno = 17 (0x11), region = 16 }
   0xb   : > { %s204_s13 = sshll.u32 (!%p203_p1), %s38_s11, 1  ;;  %s205_s14 = sshll.u32 (!%p203_p1), %s41_s12, 1 }
   0xc   : > { %s45_s17 = scalar_lea.vmem (!%p203_p1), %s311_s0, %s205_s14  ;;  %s40_s18 = scalar_lea.vmem (!%p203_p1), [#allocation1], %s204_s13 }
   0xd   : > { %v61_v2 = vld [vmem:[%s45_s17] sm:$0x3] (!%p203_p1) }
   0xe   : > { %62 = vst [vmem:[%s40_s18] sm:$0x3] (!%p203_p1), %v61_v2 }
  0x11 PF: > { %p206_p2 = scmp.ge.s32.totalorder %s259_s8, 1  ;;  %p78_p3 = scmp.lt.s32.totalorder %s259_s8, 3 }
  0x13   : > { %p79_p4 = pnand %p206_p2, %p78_p3 }
  0x14   : > { %s89_s19 = sand.u32 (!%p79_p4), 1, %s201_s9   ;;  %s210_s23 = sshll.u32 (!%p79_p4), %s251_s6, 1 }
  0x15   : > { %82 = sbr.rel (%p79_p4) target bundleno = 177 (0xb1), region = 50  ;;  %s207_s20 = sshll.u32 (!%p79_p4), %s89_s19, 1 }
  0x16   : > { %s91_s21 = scalar_lea.vmem (!%p79_p4), [#allocation1], %s207_s20  ;;  %s95_s22 = scalar_lea.vmem (!%p79_p4), [#allocation3], %s207_s20 }
  0x17   : > { %v98_v3 = vld [vmem:[%s91_s21] sm:$0x3] (!%p79_p4)  ;;  %s118_s26 = scalar_lea.vmem (!%p79_p4), %s312_s1, %s210_s23 }
  0x18   : > { %99 = vst [vmem:[#allocation0] sm:$0x3] (!%p79_p4), %v98_v3 }
  0x1f   : > { %v101_v4 = vld [vmem:[#allocation0] sm:$0xff] }
  0x20   : > { %102 = vperm.xlu0 %4, %v101_v4  }
  0x9f   : > { %v103_v5 = vpop.permute.xlu0 %102 }
  0xa0   : > { %104 = vst [vmem:[#allocation2] sm:$0xff] %v103_v5 }
  0xa7   : > { %v108_v6 = vld [vmem:[#allocation2] sm:$0x3] }
  0xa8   : > { %110 = vst [vmem:[%s95_s22] sm:$0x3] %v108_v6 }
  0xaf   : > { %v134_v7 = vld [vmem:[%s95_s22] sm:$0x3] }
  0xb0   : > { %135 = vst [vmem:[%s118_s26] sm:$0x3] %v134_v7 }
  0xb1 PF: > { %s10_s8 = sadd.s32 1, %s259_s8   ;;  %s313_s6 = smov %s255_s7 }
  0xb2   : > { %p7_p5 = scmp.ge.s32.totalorder %s10_s8, 4   ;;  %s314_s7 = smov %s316_s10 }
  0xb4   :  { %9 = sbr.rel (!%p7_p5) target bundleno = 7 (0x7), region = 110 }

// kernel: speech2phone_forward.1
= control target key start
LH: loop header
LB: loop body
LE: loop exit
PB: predicated region body
PF: predicated region fallthrough
CT: control target
= control target key end

     0   :  { %s9427_s1 = inlined_call_operand.vmem [shape: bf16[7168,128], index: 1, kind: input, shape index: {}]   ;;  %s9428_s0 = inlined_call_operand.vmem [shape: bf16[16,7168], index: 0, kind: input, shape index: {}]   ;;  %s9429_s2 = inlined_call_operand.vmem [shape: f32[1,128], index: 2, kind: input, shape index: {}]   ;;  %s9430_s3 = inlined_call_operand.vmem [shape: bf16[256,640], index: 3, kind: input, shape index: {}]   ;;  %s9431_s4 = inlined_call_operand.vmem [shape: f32[1,640], index: 4, kind: input, shape index: {}]   ;;  %s9432_s5 = inlined_call_operand.vmem [shape: f32[16,640], index: 5, kind: output, shape index: {}]  }
   0x1   :  { %v7007_v0 = vld [vmem:[%s9427_s1 + $0x40] sm:$0xff]   ;;  %v7011_v4 = vld [vmem:[%s9427_s1 + $0x48] sm:$0xff]   ;;  %v7015_v8 = vld [vmem:[%s9427_s1 + $0x50] sm:$0xff]  }
   0x2   :  { %v7008_v1 = vld [vmem:[%s9427_s1 + $0xc0] sm:$0xff]   ;;  %6369 = vmatprep.subr.bf16.mxu0 %v7007_v0  ;;  %v7012_v5 = vld [vmem:[%s9427_s1 + $0xc8] sm:$0xff]   ;;  %v7016_v9 = vld [vmem:[%s9427_s1 + $0xd0] sm:$0xff]  }
   0x3   :  { %v7009_v2 = vld [vmem:[%s9427_s1] sm:$0xff]   ;;  %6391 = vmatprep.subr.bf16.mxu1 %v7008_v1  ;;  %v7013_v6 = vld [vmem:[%s9427_s1 + $0x8] sm:$0xff]   ;;  %v7017_v10 = vld [vmem:[%s9427_s1 + $0x10] sm:$0xff]  }
   0x4   :  { %v7010_v3 = vld [vmem:[%s9427_s1 + $0x80] sm:$0xff]   ;;  %6370 = vmatpush3.bf16.msra.mxu0 %v7009_v2  ;;  %v7014_v7 = vld [vmem:[%s9427_s1 + $0x88] sm:$0xff]   ;;  %v7018_v11 = vld [vmem:[%s9427_s1 + $0x90] sm:$0xff]  }
   0x5   :  { %6392 = vmatpush3.bf16.msra.mxu1 %v7010_v3  ;;  %6371 = vmatprep.subr.bf16.mxu0 %v7011_v4  ;;  %v7019_v12 = vld [vmem:[%s9427_s1 + $0x58] sm:$0xff]   ;;  %v7023_v16 = vld [vmem:[%s9427_s1 + $0x60] sm:$0xff]   ;;  %v7027_v20 = vld [vmem:[%s9427_s1 + $0x68] sm:$0xff]  }
   0x6   :  { %6393 = vmatprep.subr.bf16.mxu1 %v7012_v5  ;;  %v7020_v13 = vld [vmem:[%s9427_s1 + $0xd8] sm:$0xff]   ;;  %v7024_v17 = vld [vmem:[%s9427_s1 + $0xe0] sm:$0xff]   ;;  %v7028_v21 = vld [vmem:[%s9427_s1 + $0xe8] sm:$0xff]  }
   0x7   :  { %v7021_v14 = vld [vmem:[%s9427_s1 + $0x18] sm:$0xff]   ;;  %v7025_v18 = vld [vmem:[%s9427_s1 + $0x20] sm:$0xff]   ;;  %v7029_v22 = vld [vmem:[%s9427_s1 + $0x28] sm:$0xff]  }
   0x8   :  { %6372 = vmatpush3.bf16.msra.mxu0 %v7013_v6  ;;  %v7022_v15 = vld [vmem:[%s9427_s1 + $0x98] sm:$0xff]   ;;  %v7026_v19 = vld [vmem:[%s9427_s1 + $0xa0] sm:$0xff]   ;;  %v7030_v23 = vld [vmem:[%s9427_s1 + $0xa8] sm:$0xff]  }
   0x9   :  { %6394 = vmatpush3.bf16.msra.mxu1 %v7014_v7  ;;  %6373 = vmatprep.subr.bf16.mxu0 %v7015_v8  ;;  %v7031_v24 = vld [vmem:[%s9427_s1 + $0x70] sm:$0xff]   ;;  %v7035_v28 = vld [vmem:[%s9427_s1 + $0x78] sm:$0xff]   ;;  %v21_v32 = vld [vmem:[%s9428_s0] sm:$0xff] }
   0xa   :  { %6395 = vmatprep.subr.bf16.mxu1 %v7016_v9  ;;  %v7032_v25 = vld [vmem:[%s9427_s1 + $0xf0] sm:$0xff]   ;;  %v7036_v29 = vld [vmem:[%s9427_s1 + $0xf8] sm:$0xff]   ;;  %v49_v33 = vld [vmem:[%s9428_s0 + $0xe0] sm:$0xff] }
   0xb   :  { %v7033_v26 = vld [vmem:[%s9427_s1 + $0x30] sm:$0xff]   ;;  %v7037_v30 = vld [vmem:[%s9427_s1 + $0x38] sm:$0xff]   ;;  %v22_v34 = vld [vmem:[%s9428_s0 + $0x8] sm:$0xff]  ;;  %v5785_v35 = vcombine.low %v21_v32, %v49_v33  ;;  %v5786_v36 = vcombine.high %v21_v32, %v49_v33 }
   0xc   :  { %6374 = vmatpush3.bf16.msra.mxu0 %v7017_v10  ;;  %v7034_v27 = vld [vmem:[%s9427_s1 + $0xb0] sm:$0xff]   ;;  %v7038_v31 = vld [vmem:[%s9427_s1 + $0xb8] sm:$0xff]   ;;  %v50_v37 = vld [vmem:[%s9428_s0 + $0xe8] sm:$0xff] }
   0xd   :  { %6396 = vmatpush3.bf16.msra.mxu1 %v7018_v11  ;;  %6375 = vmatprep.subr.bf16.mxu0 %v7019_v12  ;;  %v5787_v38 = vcombine.low %v22_v34, %v50_v37  ;;  %v5788_v39 = vcombine.high %v22_v34, %v50_v37  ;;  %v7039_v40 = vld [vmem:[%s9427_s1 + $0x140] sm:$0xff]   ;;  %v7043_v44 = vld [vmem:[%s9427_s1 + $0x148] sm:$0xff]   ;;  %v7047_v48 = vld [vmem:[%s9427_s1 + $0x150] sm:$0xff]  }
   0xe   :  { %6397 = vmatprep.subr.bf16.mxu1 %v7020_v13  ;;  %3980 = vmatprep.mubr.bf16.mxu0 %v5786_v36  ;;  %v7040_v41 = vld [vmem:[%s9427_s1 + $0x1c0] sm:$0xff]   ;;  %v7044_v45 = vld [vmem:[%s9427_s1 + $0x1c8] sm:$0xff]   ;;  %v7048_v49 = vld [vmem:[%s9427_s1 + $0x1d0] sm:$0xff]  }
   0xf   :  { %4021 = vmatprep.mubr.bf16.mxu1 %v5788_v39  ;;  %v7041_v42 = vld [vmem:[%s9427_s1 + $0x100] sm:$0xff]   ;;  %v7045_v46 = vld [vmem:[%s9427_s1 + $0x108] sm:$0xff]   ;;  %v7049_v50 = vld [vmem:[%s9427_s1 + $0x110] sm:$0xff]  }
  0x10   :  { %6376 = vmatpush3.bf16.msra.mxu0 %v7021_v14  ;;  %v7042_v43 = vld [vmem:[%s9427_s1 + $0x180] sm:$0xff]   ;;  %v7046_v47 = vld [vmem:[%s9427_s1 + $0x188] sm:$0xff]   ;;  %v7050_v51 = vld [vmem:[%s9427_s1 + $0x190] sm:$0xff]  }
  0x11   :  { %6398 = vmatpush3.bf16.msra.mxu1 %v7022_v15  ;;  %6377 = vmatprep.subr.bf16.mxu0 %v7023_v16  ;;  %v7051_v52 = vld [vmem:[%s9427_s1 + $0x158] sm:$0xff]   ;;  %v7055_v56 = vld [vmem:[%s9427_s1 + $0x160] sm:$0xff]   ;;  %v7059_v60 = vld [vmem:[%s9427_s1 + $0x168] sm:$0xff]  }
  0x12   :  { %6399 = vmatprep.subr.bf16.mxu1 %v7024_v17  ;;  %v7052_v53 = vld [vmem:[%s9427_s1 + $0x1d8] sm:$0xff]   ;;  %v7056_v57 = vld [vmem:[%s9427_s1 + $0x1e0] sm:$0xff]   ;;  %v7060_v61 = vld [vmem:[%s9427_s1 + $0x1e8] sm:$0xff]  }
  0x13   :  { %v7053_v54 = vld [vmem:[%s9427_s1 + $0x118] sm:$0xff]   ;;  %v7057_v58 = vld [vmem:[%s9427_s1 + $0x120] sm:$0xff]   ;;  %v7061_v62 = vld [vmem:[%s9427_s1 + $0x128] sm:$0xff]  }
  0x14   :  { %6378 = vmatpush3.bf16.msra.mxu0 %v7025_v18  ;;  %v7054_v55 = vld [vmem:[%s9427_s1 + $0x198] sm:$0xff]   ;;  %v7058_v59 = vld [vmem:[%s9427_s1 + $0x1a0] sm:$0xff]   ;;  %v7062_v63 = vld [vmem:[%s9427_s1 + $0x1a8] sm:$0xff]  }
  0x15   :  { %6400 = vmatpush3.bf16.msra.mxu1 %v7026_v19  ;;  %6379 = vmatprep.subr.bf16.mxu0 %v7027_v20  ;;  %v7063_v0 = vld [vmem:[%s9427_s1 + $0x170] sm:$0xff]   ;;  %v7067_v4 = vld [vmem:[%s9427_s1 + $0x178] sm:$0xff]   ;;  %v7071_v16 = vld [vmem:[%s9427_s1 + $0x240] sm:$0xff]  }
  0x16   :  { %6401 = vmatprep.subr.bf16.mxu1 %v7028_v21  ;;  %v7064_v1 = vld [vmem:[%s9427_s1 + $0x1f0] sm:$0xff]   ;;  %v7068_v5 = vld [vmem:[%s9427_s1 + $0x1f8] sm:$0xff]   ;;  %v7072_v17 = vld [vmem:[%s9427_s1 + $0x2c0] sm:$0xff]  }
  0x17   :  { %v7065_v2 = vld [vmem:[%s9427_s1 + $0x130] sm:$0xff]   ;;  %v7069_v6 = vld [vmem:[%s9427_s1 + $0x138] sm:$0xff]   ;;  %v7073_v18 = vld [vmem:[%s9427_s1 + $0x200] sm:$0xff]  }
  0x18   :  { %6380 = vmatpush3.bf16.msra.mxu0 %v7029_v22  ;;  %v7066_v3 = vld [vmem:[%s9427_s1 + $0x1b0] sm:$0xff]   ;;  %v7070_v7 = vld [vmem:[%s9427_s1 + $0x1b8] sm:$0xff]   ;;  %v7074_v19 = vld [vmem:[%s9427_s1 + $0x280] sm:$0xff]  }
  0x19   :  { %6402 = vmatpush3.bf16.msra.mxu1 %v7030_v23  ;;  %6381 = vmatprep.subr.bf16.mxu0 %v7031_v24  ;;  %v23_v8 = vld [vmem:[%s9428_s0 + $0x10] sm:$0xff]  ;;  %v24_v12 = vld [vmem:[%s9428_s0 + $0x18] sm:$0xff]  ;;  %v7075_v20 = vld [vmem:[%s9427_s1 + $0x248] sm:$0xff]  }
  0x1a   :  { %6403 = vmatprep.subr.bf16.mxu1 %v7032_v25  ;;  %v51_v9 = vld [vmem:[%s9428_s0 + $0xf0] sm:$0xff]  ;;  %v52_v13 = vld [vmem:[%s9428_s0 + $0xf8] sm:$0xff]  ;;  %v7076_v21 = vld [vmem:[%s9427_s1 + $0x2c8] sm:$0xff]  }
  0x1b   :  { %v5789_v10 = vcombine.low %v23_v8, %v51_v9  ;;  %v5790_v11 = vcombine.high %v23_v8, %v51_v9  ;;  %v5791_v14 = vcombine.low %v24_v12, %v52_v13  ;;  %v5792_v15 = vcombine.high %v24_v12, %v52_v13  ;;  %v7077_v22 = vld [vmem:[%s9427_s1 + $0x208] sm:$0xff]   ;;  %v7079_v24 = vld [vmem:[%s9427_s1 + $0x250] sm:$0xff]   ;;  %v7087_v32 = vld [vmem:[%s9427_s1 + $0x260] sm:$0xff]  }
  0x1c   :  { %6382 = vmatpush3.bf16.msra.mxu0 %v7033_v26  ;;  %v7078_v23 = vld [vmem:[%s9427_s1 + $0x288] sm:$0xff]   ;;  %v7080_v25 = vld [vmem:[%s9427_s1 + $0x2d0] sm:$0xff]   ;;  %v7088_v33 = vld [vmem:[%s9427_s1 + $0x2e0] sm:$0xff]  }
  0x1d   :  { %6404 = vmatpush3.bf16.msra.mxu1 %v7034_v27  ;;  %6383 = vmatprep.subr.bf16.mxu0 %v7035_v28  ;;  %v7081_v26 = vld [vmem:[%s9427_s1 + $0x210] sm:$0xff]   ;;  %v7083_v28 = vld [vmem:[%s9427_s1 + $0x258] sm:$0xff]   ;;  %v7089_v34 = vld [vmem:[%s9427_s1 + $0x220] sm:$0xff]  }
  0x1e   :  { %6405 = vmatprep.subr.bf16.mxu1 %v7036_v29  ;;  %v7082_v27 = vld [vmem:[%s9427_s1 + $0x290] sm:$0xff]   ;;  %v7084_v29 = vld [vmem:[%s9427_s1 + $0x2d8] sm:$0xff]   ;;  %v7091_v36 = vld [vmem:[%s9427_s1 + $0x268] sm:$0xff]  }
  0x1f   :  { %v7092_v37 = vld [vmem:[%s9427_s1 + $0x2e8] sm:$0xff]   ;;  %v7119_v8 = vld [vmem:[%s9427_s1 + $0x360] sm:$0xff]  }
  0x20   :  { %6384 = vmatpush3.bf16.msra.mxu0 %v7037_v30  ;;  %v7085_v30 = vld [vmem:[%s9427_s1 + $0x218] sm:$0xff]   ;;  %v7094_v39 = vld [vmem:[%s9427_s1 + $0x2a8] sm:$0xff]   ;;  %v7120_v9 = vld [vmem:[%s9427_s1 + $0x3e0] sm:$0xff]  }
  0x21   :  { %6406 = vmatpush3.bf16.msra.mxu1 %v7038_v31  ;;  %6413 = vmatprep.subr.bf16.mxu0 %v7039_v40  ;;  %v7086_v31 = vld [vmem:[%s9427_s1 + $0x298] sm:$0xff]   ;;  %v7095_v40 = vld [vmem:[%s9427_s1 + $0x270] sm:$0xff]   ;;  %v7123_v12 = vld [vmem:[%s9427_s1 + $0x368] sm:$0xff]  }
  0x22   :  { %6435 = vmatprep.subr.bf16.mxu1 %v7040_v41  ;;  %v7096_v41 = vld [vmem:[%s9427_s1 + $0x2f0] sm:$0xff]   ;;  %v7124_v13 = vld [vmem:[%s9427_s1 + $0x3e8] sm:$0xff]  }
  0x23   :  { %3981 = vmatmul.mubr.bf16.vlgmr.msra.gmra.mrb[0].mxu0 %v5785_v35  ;;  %v7090_v35 = vld [vmem:[%s9427_s1 + $0x2a0] sm:$0xff]  }
  0x24   :  { %4022 = vmatmul.mubr.bf16.vlgmr.msra.gmra.mrb[0].mxu1 %v5787_v38  ;;  %6414 = vmatpush3.bf16.msra.mxu0 %v7041_v42  ;;  %v7093_v38 = vld [vmem:[%s9427_s1 + $0x228] sm:$0xff]   ;;  %v7097_v42 = vld [vmem:[%s9427_s1 + $0x230] sm:$0xff]  }
  0x25   :  { %6436 = vmatpush3.bf16.msra.mxu1 %v7042_v43  ;;  %6415 = vmatprep.subr.bf16.mxu0 %v7043_v44  ;;  %v7098_v43 = vld [vmem:[%s9427_s1 + $0x2b0] sm:$0xff]   ;;  %v7099_v44 = vld [vmem:[%s9427_s1 + $0x278] sm:$0xff]  }
  0x26   :  { %6437 = vmatprep.subr.bf16.mxu1 %v7044_v45  ;;  %4062 = vmatprep.mubr.bf16.mxu0 %v5790_v11  ;;  %v7100_v45 = vld [vmem:[%s9427_s1 + $0x2f8] sm:$0xff]   ;;  %v7122_v11 = vld [vmem:[%s9427_s1 + $0x3a0] sm:$0xff]  }
  0x27   :  { %4103 = vmatprep.mubr.bf16.mxu1 %v5792_v15  ;;  %v7126_v15 = vld [vmem:[%s9427_s1 + $0x3a8] sm:$0xff]  }
  0x28   :  { %6416 = vmatpush3.bf16.msra.mxu0 %v7045_v46  ;;  %v7101_v46 = vld [vmem:[%s9427_s1 + $0x238] sm:$0xff]  }
  0x29   :  { %6438 = vmatpush3.bf16.msra.mxu1 %v7046_v47  ;;  %6417 = vmatprep.subr.bf16.mxu0 %v7047_v48  ;;  %v7102_v47 = vld [vmem:[%s9427_s1 + $0x2b8] sm:$0xff]   ;;  %v25_v48 = vld [vmem:[%s9428_s0 + $0x20] sm:$0xff] }
  0x2a   :  { %6439 = vmatprep.subr.bf16.mxu1 %v7048_v49  ;;  %v53_v49 = vld [vmem:[%s9428_s0 + $0x100] sm:$0xff] }
  0x2c   :  { %6418 = vmatpush3.bf16.msra.mxu0 %v7049_v50  ;;  %v26_v50 = vld [vmem:[%s9428_s0 + $0x28] sm:$0xff] }
  0x2d   :  { %6440 = vmatpush3.bf16.msra.mxu1 %v7050_v51  ;;  %6419 = vmatprep.subr.bf16.mxu0 %v7051_v52  ;;  %v54_v51 = vld [vmem:[%s9428_s0 + $0x108] sm:$0xff]  ;;  %v5793_v52 = vcombine.low %v25_v48, %v53_v49 }
  0x2e   :  { %6441 = vmatprep.subr.bf16.mxu1 %v7052_v53  ;;  %v5794_v53 = vcombine.high %v25_v48, %v53_v49  ;;  %v7151_v48 = vld [vmem:[%s9427_s1 + $0x460] sm:$0xff]  }
  0x2f   :  { %v7152_v49 = vld [vmem:[%s9427_s1 + $0x4e0] sm:$0xff]  }
  0x30   :  { %6420 = vmatpush3.bf16.msra.mxu0 %v7053_v54  ;;  %v5795_v54 = vcombine.low %v26_v50, %v54_v51 }
  0x31   :  { %6442 = vmatpush3.bf16.msra.mxu1 %v7054_v55  ;;  %6421 = vmatprep.subr.bf16.mxu0 %v7055_v56  ;;  %v5796_v55 = vcombine.high %v26_v50, %v54_v51  ;;  %v7103_v56 = vld [vmem:[%s9427_s1 + $0x340] sm:$0xff]  }
  0x32   :  { %6443 = vmatprep.subr.bf16.mxu1 %v7056_v57  ;;  %v7104_v57 = vld [vmem:[%s9427_s1 + $0x3c0] sm:$0xff]  }
  0x33   :  { %v7153_v50 = vld [vmem:[%s9427_s1 + $0x420] sm:$0xff]  }
  0x34   :  { %6422 = vmatpush3.bf16.msra.mxu0 %v7057_v58  ;;  %v7105_v58 = vld [vmem:[%s9427_s1 + $0x300] sm:$0xff]  }
  0x35   :  { %6444 = vmatpush3.bf16.msra.mxu1 %v7058_v59  ;;  %6423 = vmatprep.subr.bf16.mxu0 %v7059_v60  ;;  %v7106_v59 = vld [vmem:[%s9427_s1 + $0x380] sm:$0xff]   ;;  %v7107_v60 = vld [vmem:[%s9427_s1 + $0x348] sm:$0xff]  }
  0x36   :  { %6445 = vmatprep.subr.bf16.mxu1 %v7060_v61  ;;  %v7108_v61 = vld [vmem:[%s9427_s1 + $0x3c8] sm:$0xff]   ;;  %v7154_v51 = vld [vmem:[%s9427_s1 + $0x4a0] sm:$0xff]  }
  0x38   :  { %6424 = vmatpush3.bf16.msra.mxu0 %v7061_v62  ;;  %v7109_v62 = vld [vmem:[%s9427_s1 + $0x308] sm:$0xff]  }
  0x39   :  { %6446 = vmatpush3.bf16.msra.mxu1 %v7062_v63  ;;  %6425 = vmatprep.subr.bf16.mxu0 %v7063_v0  ;;  %v7110_v63 = vld [vmem:[%s9427_s1 + $0x388] sm:$0xff]   ;;  %v7111_v0 = vld [vmem:[%s9427_s1 + $0x350] sm:$0xff]  }
  0x3a   :  { %6447 = vmatprep.subr.bf16.mxu1 %v7064_v1  ;;  %v7112_v1 = vld [vmem:[%s9427_s1 + $0x3d0] sm:$0xff]  }
  0x3c   :  { %6426 = vmatpush3.bf16.msra.mxu0 %v7065_v2  ;;  %v7113_v2 = vld [vmem:[%s9427_s1 + $0x310] sm:$0xff]  }
  0x3d   :  { %6448 = vmatpush3.bf16.msra.mxu1 %v7066_v3  ;;  %6427 = vmatprep.subr.bf16.mxu0 %v7067_v4  ;;  %v7114_v3 = vld [vmem:[%s9427_s1 + $0x390] sm:$0xff]   ;;  %v7115_v4 = vld [vmem:[%s9427_s1 + $0x358] sm:$0xff]  }
  0x3e   :  { %6449 = vmatprep.subr.bf16.mxu1 %v7068_v5  ;;  %v7116_v5 = vld [vmem:[%s9427_s1 + $0x3d8] sm:$0xff]  }
  0x40   :  { %6428 = vmatpush3.bf16.msra.mxu0 %v7069_v6  ;;  %v7117_v6 = vld [vmem:[%s9427_s1 + $0x318] sm:$0xff]  }
  0x41   :  { %6450 = vmatpush3.bf16.msra.mxu1 %v7070_v7  ;;  %6457 = vmatprep.subr.bf16.mxu0 %v7071_v16  ;;  %v7118_v7 = vld [vmem:[%s9427_s1 + $0x398] sm:$0xff]   ;;  %v7127_v16 = vld [vmem:[%s9427_s1 + $0x370] sm:$0xff]  }
  0x42   :  { %6479 = vmatprep.subr.bf16.mxu1 %v7072_v17  ;;  %v7128_v17 = vld [vmem:[%s9427_s1 + $0x3f0] sm:$0xff]  }
  0x43   :  { %4063 = vmatmul.mubr.bf16.vlgmr.msra.gmra.mrb[4].mxu0 %v5789_v10  ;;  %v7121_v10 = vld [vmem:[%s9427_s1 + $0x320] sm:$0xff]  }
  0x44   :  { %4104 = vmatmul.mubr.bf16.vlgmr.msra.gmra.mrb[4].mxu1 %v5791_v14  ;;  %6458 = vmatpush3.bf16.msra.mxu0 %v7073_v18  ;;  %v7125_v14 = vld [vmem:[%s9427_s1 + $0x328] sm:$0xff]   ;;  %v7129_v18 = vld [vmem:[%s9427_s1 + $0x330] sm:$0xff]  }
  0x45   :  { %6480 = vmatpush3.bf16.msra.mxu1 %v7074_v19  ;;  %6459 = vmatprep.subr.bf16.mxu0 %v7075_v20  ;;  %v7130_v19 = vld [vmem:[%s9427_s1 + $0x3b0] sm:$0xff]   ;;  %v7131_v20 = vld [vmem:[%s9427_s1 + $0x378] sm:$0xff]  }
  0x46   :  { %6481 = vmatprep.subr.bf16.mxu1 %v7076_v21  ;;  %4144 = vmatprep.mubr.bf16.mxu0 %v5794_v53  ;;  %v7132_v21 = vld [vmem:[%s9427_s1 + $0x3f8] sm:$0xff]   ;;  %v7156_v53 = vld [vmem:[%s9427_s1 + $0x4e8] sm:$0xff]  }
  0x47   :  { %4185 = vmatprep.mubr.bf16.mxu1 %v5796_v55  ;;  %v7158_v55 = vld [vmem:[%s9427_s1 + $0x4a8] sm:$0xff]  }
  0x48   :  { %6460 = vmatpush3.bf16.msra.mxu0 %v7077_v22  ;;  %v7133_v22 = vld [vmem:[%s9427_s1 + $0x338] sm:$0xff]  }
  0x49   :  { %6482 = vmatpush3.bf16.msra.mxu1 %v7078_v23  ;;  %6461 = vmatprep.subr.bf16.mxu0 %v7079_v24  ;;  %v7134_v23 = vld [vmem:[%s9427_s1 + $0x3b8] sm:$0xff]   ;;  %v27_v24 = vld [vmem:[%s9428_s0 + $0x30] sm:$0xff] }
  0x4a   :  { %6483 = vmatprep.subr.bf16.mxu1 %v7080_v25  ;;  %v55_v25 = vld [vmem:[%s9428_s0 + $0x110] sm:$0xff] }
  0x4c   :  { %6462 = vmatpush3.bf16.msra.mxu0 %v7081_v26  ;;  %v28_v26 = vld [vmem:[%s9428_s0 + $0x38] sm:$0xff] }
  0x4d   :  { %6484 = vmatpush3.bf16.msra.mxu1 %v7082_v27  ;;  %6463 = vmatprep.subr.bf16.mxu0 %v7083_v28  ;;  %v5797_v27 = vcombine.low %v27_v24, %v55_v25  ;;  %v5798_v28 = vcombine.high %v27_v24, %v55_v25  ;;  %v7183_v24 = vld [vmem:[%s9427_s1 + $0x560] sm:$0xff]  }
  0x4e   :  { %6485 = vmatprep.subr.bf16.mxu1 %v7084_v29  ;;  %v56_v29 = vld [vmem:[%s9428_s0 + $0x118] sm:$0xff]  ;;  %v7184_v25 = vld [vmem:[%s9427_s1 + $0x5e0] sm:$0xff]  }
  0x50   :  { %6464 = vmatpush3.bf16.msra.mxu0 %v7085_v30  ;;  %v5799_v30 = vcombine.low %v28_v26, %v56_v29 }
  0x51   :  { %6486 = vmatpush3.bf16.msra.mxu1 %v7086_v31  ;;  %6465 = vmatprep.subr.bf16.mxu0 %v7087_v32  ;;  %v5800_v31 = vcombine.high %v28_v26, %v56_v29  ;;  %v7135_v32 = vld [vmem:[%s9427_s1 + $0x440] sm:$0xff]   ;;  %v7188_v29 = vld [vmem:[%s9427_s1 + $0x5e8] sm:$0xff]  }
  0x52   :  { %6487 = vmatprep.subr.bf16.mxu1 %v7088_v33  ;;  %v7136_v33 = vld [vmem:[%s9427_s1 + $0x4c0] sm:$0xff]  }
  0x53   :  { %v7185_v26 = vld [vmem:[%s9427_s1 + $0x520] sm:$0xff]  }
  0x54   :  { %6466 = vmatpush3.bf16.msra.mxu0 %v7089_v34  ;;  %v7137_v34 = vld [vmem:[%s9427_s1 + $0x400] sm:$0xff]  }
  0x55   :  { %6488 = vmatpush3.bf16.msra.mxu1 %v7090_v35  ;;  %6467 = vmatprep.subr.bf16.mxu0 %v7091_v36  ;;  %v7138_v35 = vld [vmem:[%s9427_s1 + $0x480] sm:$0xff]   ;;  %v7139_v36 = vld [vmem:[%s9427_s1 + $0x448] sm:$0xff]  }
  0x56   :  { %6489 = vmatprep.subr.bf16.mxu1 %v7092_v37  ;;  %v7140_v37 = vld [vmem:[%s9427_s1 + $0x4c8] sm:$0xff]  }
  0x58   :  { %6468 = vmatpush3.bf16.msra.mxu0 %v7093_v38  ;;  %v7141_v38 = vld [vmem:[%s9427_s1 + $0x408] sm:$0xff]  }
  0x59   :  { %6490 = vmatpush3.bf16.msra.mxu1 %v7094_v39  ;;  %6469 = vmatprep.subr.bf16.mxu0 %v7095_v40  ;;  %v7142_v39 = vld [vmem:[%s9427_s1 + $0x488] sm:$0xff]   ;;  %v7143_v40 = vld [vmem:[%s9427_s1 + $0x450] sm:$0xff]  }
  0x5a   :  { %6491 = vmatprep.subr.bf16.mxu1 %v7096_v41  ;;  %v7144_v41 = vld [vmem:[%s9427_s1 + $0x4d0] sm:$0xff]  }
  0x5c   :  { %6470 = vmatpush3.bf16.msra.mxu0 %v7097_v42  ;;  %v7145_v42 = vld [vmem:[%s9427_s1 + $0x410] sm:$0xff]  }
  0x5d   :  { %6492 = vmatpush3.bf16.msra.mxu1 %v7098_v43  ;;  %6471 = vmatprep.subr.bf16.mxu0 %v7099_v44  ;;  %v7146_v43 = vld [vmem:[%s9427_s1 + $0x490] sm:$0xff]   ;;  %v7147_v44 = vld [vmem:[%s9427_s1 + $0x458] sm:$0xff]  }
  0x5e   :  { %6493 = vmatprep.subr.bf16.mxu1 %v7100_v45  ;;  %v7148_v45 = vld [vmem:[%s9427_s1 + $0x4d8] sm:$0xff]  }
  0x60   :  { %6472 = vmatpush3.bf16.msra.mxu0 %v7101_v46  ;;  %v7149_v46 = vld [vmem:[%s9427_s1 + $0x418] sm:$0xff]  }
  0x61   :  { %6494 = vmatpush3.bf16.msra.mxu1 %v7102_v47  ;;  %6501 = vmatprep.subr.bf16.mxu0 %v7103_v56  ;;  %v7150_v47 = vld [vmem:[%s9427_s1 + $0x498] sm:$0xff]   ;;  %v7159_v56 = vld [vmem:[%s9427_s1 + $0x470] sm:$0xff]  }
  0x62   :  { %6523 = vmatprep.subr.bf16.mxu1 %v7104_v57  ;;  %v7160_v57 = vld [vmem:[%s9427_s1 + $0x4f0] sm:$0xff]  }
  0x63   :  { %4145 = vmatmul.mubr.bf16.vlgmr.msra.gmra.mrb[8].mxu0 %v5793_v52  ;;  %v7155_v52 = vld [vmem:[%s9427_s1 + $0x468] sm:$0xff]  }
  0x64   :  { %4186 = vmatmul.mubr.bf16.vlgmr.msra.gmra.mrb[8].mxu1 %v5795_v54  ;;  %6502 = vmatpush3.bf16.msra.mxu0 %v7105_v58  ;;  %v7157_v54 = vld [vmem:[%s9427_s1 + $0x428] sm:$0xff]   ;;  %v7161_v58 = vld [vmem:[%s9427_s1 + $0x430] sm:$0xff]  }
  0x65   :  { %6524 = vmatpush3.bf16.msra.mxu1 %v7106_v59  ;;  %6503 = vmatprep.subr.bf16.mxu0 %v7107_v60  ;;  %v7162_v59 = vld [vmem:[%s9427_s1 + $0x4b0] sm:$0xff]   ;;  %v7163_v60 = vld [vmem:[%s9427_s1 + $0x478] sm:$0xff]  }
  0x66   :  { %6525 = vmatprep.subr.bf16.mxu1 %v7108_v61  ;;  %4226 = vmatprep.mubr.bf16.mxu0 %v5798_v28  ;;  %v7164_v61 = vld [vmem:[%s9427_s1 + $0x4f8] sm:$0xff]   ;;  %v7187_v28 = vld [vmem:[%s9427_s1 + $0x568] sm:$0xff]  }
  0x67   :  { %4267 = vmatprep.mubr.bf16.mxu1 %v5800_v31  ;;  %v7190_v31 = vld [vmem:[%s9427_s1 + $0x5a8] sm:$0xff]  }
  0x68   :  { %6504 = vmatpush3.bf16.msra.mxu0 %v7109_v62  ;;  %v7165_v62 = vld [vmem:[%s9427_s1 + $0x438] sm:$0xff]  }
  0x69   :  { %6526 = vmatpush3.bf16.msra.mxu1 %v7110_v63  ;;  %6505 = vmatprep.subr.bf16.mxu0 %v7111_v0  ;;  %v7166_v63 = vld [vmem:[%s9427_s1 + $0x4b8] sm:$0xff]   ;;  %v29_v0 = vld [vmem:[%s9428_s0 + $0x40] sm:$0xff] }
  0x6a   :  { %6527 = vmatprep.subr.bf16.mxu1 %v7112_v1  ;;  %v57_v1 = vld [vmem:[%s9428_s0 + $0x120] sm:$0xff] }
  0x6c   :  { %6506 = vmatpush3.bf16.msra.mxu0 %v7113_v2  ;;  %v5801_v2 = vcombine.low %v29_v0, %v57_v1 }
  0x6d   :  { %6528 = vmatpush3.bf16.msra.mxu1 %v7114_v3  ;;  %6507 = vmatprep.subr.bf16.mxu0 %v7115_v4  ;;  %v5802_v3 = vcombine.high %v29_v0, %v57_v1  ;;  %v30_v4 = vld [vmem:[%s9428_s0 + $0x48] sm:$0xff]  ;;  %v7215_v0 = vld [vmem:[%s9427_s1 + $0x660] sm:$0xff]  }
  0x6e   :  { %6529 = vmatprep.subr.bf16.mxu1 %v7116_v5  ;;  %v58_v5 = vld [vmem:[%s9428_s0 + $0x128] sm:$0xff]  ;;  %v7216_v1 = vld [vmem:[%s9427_s1 + $0x6e0] sm:$0xff]  }
  0x70   :  { %6508 = vmatpush3.bf16.msra.mxu0 %v7117_v6  ;;  %v5803_v6 = vcombine.low %v30_v4, %v58_v5 }
  0x71   :  { %6530 = vmatpush3.bf16.msra.mxu1 %v7118_v7  ;;  %6509 = vmatprep.subr.bf16.mxu0 %v7119_v8  ;;  %v5804_v7 = vcombine.high %v30_v4, %v58_v5  ;;  %v7167_v8 = vld [vmem:[%s9427_s1 + $0x540] sm:$0xff]   ;;  %v7219_v4 = vld [vmem:[%s9427_s1 + $0x668] sm:$0xff]  }
  0x72   :  { %6531 = vmatprep.subr.bf16.mxu1 %v7120_v9  ;;  %v7168_v9 = vld [vmem:[%s9427_s1 + $0x5c0] sm:$0xff]   ;;  %v7220_v5 = vld [vmem:[%s9427_s1 + $0x6e8] sm:$0xff]  }
  0x74   :  { %6510 = vmatpush3.bf16.msra.mxu0 %v7121_v10  ;;  %v7169_v10 = vld [vmem:[%s9427_s1 + $0x500] sm:$0xff]  }
  0x75   :  { %6532 = vmatpush3.bf16.msra.mxu1 %v7122_v11  ;;  %6511 = vmatprep.subr.bf16.mxu0 %v7123_v12  ;;  %v7170_v11 = vld [vmem:[%s9427_s1 + $0x580] sm:$0xff]   ;;  %v7171_v12 = vld [vmem:[%s9427_s1 + $0x548] sm:$0xff]  }
  0x76   :  { %6533 = vmatprep.subr.bf16.mxu1 %v7124_v13  ;;  %v7172_v13 = vld [vmem:[%s9427_s1 + $0x5c8] sm:$0xff]  }
  0x78   :  { %6512 = vmatpush3.bf16.msra.mxu0 %v7125_v14  ;;  %v7173_v14 = vld [vmem:[%s9427_s1 + $0x508] sm:$0xff]  }
  0x79   :  { %6534 = vmatpush3.bf16.msra.mxu1 %v7126_v15  ;;  %6513 = vmatprep.subr.bf16.mxu0 %v7127_v16  ;;  %v7174_v15 = vld [vmem:[%s9427_s1 + $0x588] sm:$0xff]   ;;  %v7175_v16 = vld [vmem:[%s9427_s1 + $0x550] sm:$0xff]  }
  0x7a   :  { %6535 = vmatprep.subr.bf16.mxu1 %v7128_v17  ;;  %v7176_v17 = vld [vmem:[%s9427_s1 + $0x5d0] sm:$0xff]  }
  0x7c   :  { %6514 = vmatpush3.bf16.msra.mxu0 %v7129_v18  ;;  %v7177_v18 = vld [vmem:[%s9427_s1 + $0x510] sm:$0xff]  }
  0x7d   :  { %6536 = vmatpush3.bf16.msra.mxu1 %v7130_v19  ;;  %6515 = vmatprep.subr.bf16.mxu0 %v7131_v20  ;;  %v7178_v19 = vld [vmem:[%s9427_s1 + $0x590] sm:$0xff]   ;;  %v7179_v20 = vld [vmem:[%s9427_s1 + $0x558] sm:$0xff]  }
  0x7e   :  { %6537 = vmatprep.subr.bf16.mxu1 %v7132_v21  ;;  %v7180_v21 = vld [vmem:[%s9427_s1 + $0x5d8] sm:$0xff]  }
  0x80   :  { %6516 = vmatpush3.bf16.msra.mxu0 %v7133_v22  ;;  %v7181_v22 = vld [vmem:[%s9427_s1 + $0x518] sm:$0xff]  }
  0x81   :  { %6538 = vmatpush3.bf16.msra.mxu1 %v7134_v23  ;;  %6545 = vmatprep.subr.bf16.mxu0 %v7135_v32  ;;  %v7182_v23 = vld [vmem:[%s9427_s1 + $0x598] sm:$0xff]   ;;  %v7191_v32 = vld [vmem:[%s9427_s1 + $0x570] sm:$0xff]  }
  0x82   :  { %6567 = vmatprep.subr.bf16.mxu1 %v7136_v33  ;;  %v7192_v33 = vld [vmem:[%s9427_s1 + $0x5f0] sm:$0xff]  }
  0x83   :  { %4227 = vmatmul.mubr.bf16.vlgmr.msra.gmra.mrb[12].mxu0 %v5797_v27  ;;  %v7186_v27 = vld [vmem:[%s9427_s1 + $0x5a0] sm:$0xff]  }
  0x84   :  { %4268 = vmatmul.mubr.bf16.vlgmr.msra.gmra.mrb[12].mxu1 %v5799_v30  ;;  %6546 = vmatpush3.bf16.msra.mxu0 %v7137_v34  ;;  %v7189_v30 = vld [vmem:[%s9427_s1 + $0x528] sm:$0xff]   ;;  %v7193_v34 = vld [vmem:[%s9427_s1 + $0x530] sm:$0xff]  }
  0x85   :  { %6568 = vmatpush3.bf16.msra.mxu1 %v7138_v35  ;;  %6547 = vmatprep.subr.bf16.mxu0 %v7139_v36  ;;  %v7194_v35 = vld [vmem:[%s9427_s1 + $0x5b0] sm:$0xff]   ;;  %v7195_v36 = vld [vmem:[%s9427_s1 + $0x578] sm:$0xff]  }
  0x86   :  { %6569 = vmatprep.subr.bf16.mxu1 %v7140_v37  ;;  %4308 = vmatprep.mubr.bf16.mxu0 %v5802_v3  ;;  %v7196_v37 = vld [vmem:[%s9427_s1 + $0x5f8] sm:$0xff]   ;;  %v7218_v3 = vld [vmem:[%s9427_s1 + $0x6a0] sm:$0xff]  }
  0x87   :  { %4349 = vmatprep.mubr.bf16.mxu1 %v5804_v7  ;;  %v7222_v7 = vld [vmem:[%s9427_s1 + $0x6a8] sm:$0xff]  }
  0x88   :  { %6548 = vmatpush3.bf16.msra.mxu0 %v7141_v38  ;;  %v7197_v38 = vld [vmem:[%s9427_s1 + $0x538] sm:$0xff]  }
  0x89   :  { %6570 = vmatpush3.bf16.msra.mxu1 %v7142_v39  ;;  %6549 = vmatprep.subr.bf16.mxu0 %v7143_v40  ;;  %v7198_v39 = vld [vmem:[%s9427_s1 + $0x5b8] sm:$0xff]   ;;  %v31_v40 = vld [vmem:[%s9428_s0 + $0x50] sm:$0xff] }
  0x8a   :  { %6571 = vmatprep.subr.bf16.mxu1 %v7144_v41  ;;  %v59_v41 = vld [vmem:[%s9428_s0 + $0x130] sm:$0xff] }
  0x8c   :  { %6550 = vmatpush3.bf16.msra.mxu0 %v7145_v42  ;;  %v32_v42 = vld [vmem:[%s9428_s0 + $0x58] sm:$0xff] }
  0x8d   :  { %6572 = vmatpush3.bf16.msra.mxu1 %v7146_v43  ;;  %6551 = vmatprep.subr.bf16.mxu0 %v7147_v44  ;;  %v60_v43 = vld [vmem:[%s9428_s0 + $0x138] sm:$0xff]  ;;  %v5805_v44 = vcombine.low %v31_v40, %v59_v41 }
  0x8e   :  { %6573 = vmatprep.subr.bf16.mxu1 %v7148_v45  ;;  %v5806_v45 = vcombine.high %v31_v40, %v59_v41  ;;  %v7246_v41 = vld [vmem:[%s9427_s1 + $0x798] sm:$0xff]  }
  0x90   :  { %6552 = vmatpush3.bf16.msra.mxu0 %v7149_v46  ;;  %v5807_v46 = vcombine.low %v32_v42, %v60_v43 }
  0x91   :  { %6574 = vmatpush3.bf16.msra.mxu1 %v7150_v47  ;;  %6553 = vmatprep.subr.bf16.mxu0 %v7151_v48  ;;  %v5808_v47 = vcombine.high %v32_v42, %v60_v43  ;;  %v7199_v48 = vld [vmem:[%s9427_s1 + $0x640] sm:$0xff]  }
  0x92   :  { %6575 = vmatprep.subr.bf16.mxu1 %v7152_v49  ;;  %v7200_v49 = vld [vmem:[%s9427_s1 + $0x6c0] sm:$0xff]  }
  0x93   :  { %v7247_v43 = vld [vmem:[%s9427_s1 + $0x760] sm:$0xff]  }
  0x94   :  { %6554 = vmatpush3.bf16.msra.mxu0 %v7153_v50  ;;  %v7201_v50 = vld [vmem:[%s9427_s1 + $0x600] sm:$0xff]  }
  0x95   :  { %6576 = vmatpush3.bf16.msra.mxu1 %v7154_v51  ;;  %6555 = vmatprep.subr.bf16.mxu0 %v7155_v52  ;;  %v7202_v51 = vld [vmem:[%s9427_s1 + $0x680] sm:$0xff]   ;;  %v7203_v52 = vld [vmem:[%s9427_s1 + $0x648] sm:$0xff]  }
  0x96   :  { %6577 = vmatprep.subr.bf16.mxu1 %v7156_v53  ;;  %v7204_v53 = vld [vmem:[%s9427_s1 + $0x6c8] sm:$0xff]  }
  0x98   :  { %6556 = vmatpush3.bf16.msra.mxu0 %v7157_v54  ;;  %v7205_v54 = vld [vmem:[%s9427_s1 + $0x608] sm:$0xff]  }
  0x99   :  { %6578 = vmatpush3.bf16.msra.mxu1 %v7158_v55  ;;  %6557 = vmatprep.subr.bf16.mxu0 %v7159_v56  ;;  %v7206_v55 = vld [vmem:[%s9427_s1 + $0x688] sm:$0xff]   ;;  %v7207_v56 = vld [vmem:[%s9427_s1 + $0x650] sm:$0xff]  }
  0x9a   :  { %6579 = vmatprep.subr.bf16.mxu1 %v7160_v57  ;;  %v7208_v57 = vld [vmem:[%s9427_s1 + $0x6d0] sm:$0xff]  }
  0x9c   :  { %6558 = vmatpush3.bf16.msra.mxu0 %v7161_v58  ;;  %v7209_v58 = vld [vmem:[%s9427_s1 + $0x610] sm:$0xff]  }
  0x9d   :  { %6580 = vmatpush3.bf16.msra.mxu1 %v7162_v59  ;;  %6559 = vmatprep.subr.bf16.mxu0 %v7163_v60  ;;  %v7210_v59 = vld [vmem:[%s9427_s1 + $0x690] sm:$0xff]   ;;  %v7211_v60 = vld [vmem:[%s9427_s1 + $0x658] sm:$0xff]  }
  0x9e   :  { %6581 = vmatprep.subr.bf16.mxu1 %v7164_v61  ;;  %v7212_v61 = vld [vmem:[%s9427_s1 + $0x6d8] sm:$0xff]  }
  0xa0   :  { %6560 = vmatpush3.bf16.msra.mxu0 %v7165_v62  ;;  %v7213_v62 = vld [vmem:[%s9427_s1 + $0x618] sm:$0xff]  }
  0xa1   :  { %6582 = vmatpush3.bf16.msra.mxu1 %v7166_v63  ;;  %6589 = vmatprep.subr.bf16.mxu0 %v7167_v8  ;;  %v7214_v63 = vld [vmem:[%s9427_s1 + $0x698] sm:$0xff]   ;;  %v7223_v8 = vld [vmem:[%s9427_s1 + $0x670] sm:$0xff]  }
  0xa2   :  { %6611 = vmatprep.subr.bf16.mxu1 %v7168_v9  ;;  %v7224_v9 = vld [vmem:[%s9427_s1 + $0x6f0] sm:$0xff]  }
  0xa3   :  { %4309 = vmatmul.mubr.bf16.vlgmr.msra.gmra.mrb[16].mxu0 %v5801_v2  ;;  %v7217_v2 = vld [vmem:[%s9427_s1 + $0x620] sm:$0xff]  }
  0xa4   :  { %4350 = vmatmul.mubr.bf16.vlgmr.msra.gmra.mrb[16].mxu1 %v5803_v6  ;;  %6590 = vmatpush3.bf16.msra.mxu0 %v7169_v10  ;;  %v7221_v6 = vld [vmem:[%s9427_s1 + $0x628] sm:$0xff]   ;;  %v7225_v10 = vld [vmem:[%s9427_s1 + $0x630] sm:$0xff]  }
  0xa5   :  { %6612 = vmatpush3.bf16.msra.mxu1 %v7170_v11  ;;  %6591 = vmatprep.subr.bf16.mxu0 %v7171_v12  ;;  %v7226_v11 = vld [vmem:[%s9427_s1 + $0x6b0] sm:$0xff]   ;;  %v7227_v12 = vld [vmem:[%s9427_s1 + $0x678] sm:$0xff]  }
  0xa6   :  { %6613 = vmatprep.subr.bf16.mxu1 %v7172_v13  ;;  %4390 = vmatprep.mubr.bf16.mxu0 %v5806_v45  ;;  %v7228_v13 = vld [vmem:[%s9427_s1 + $0x6f8] sm:$0xff]  }
  0xa7   :  { %4431 = vmatprep.mubr.bf16.mxu1 %v5808_v47 }
  0xa8   :  { %6592 = vmatpush3.bf16.msra.mxu0 %v7173_v14  ;;  %v7229_v14 = vld [vmem:[%s9427_s1 + $0x638] sm:$0xff]  }
  0xa9   :  { %6614 = vmatpush3.bf16.msra.mxu1 %v7174_v15  ;;  %6593 = vmatprep.subr.bf16.mxu0 %v7175_v16  ;;  %v7230_v15 = vld [vmem:[%s9427_s1 + $0x6b8] sm:$0xff]   ;;  %v33_v16 = vld [vmem:[%s9428_s0 + $0x60] sm:$0xff] }
  0xaa   :  { %6615 = vmatprep.subr.bf16.mxu1 %v7176_v17  ;;  %v61_v17 = vld [vmem:[%s9428_s0 + $0x140] sm:$0xff] }
  0xac   :  { %6594 = vmatpush3.bf16.msra.mxu0 %v7177_v18  ;;  %v34_v18 = vld [vmem:[%s9428_s0 + $0x68] sm:$0xff] }
  0xad   :  { %6616 = vmatpush3.bf16.msra.mxu1 %v7178_v19  ;;  %6595 = vmatprep.subr.bf16.mxu0 %v7179_v20  ;;  %v5809_v19 = vcombine.low %v33_v16, %v61_v17  ;;  %v5810_v20 = vcombine.high %v33_v16, %v61_v17  ;;  %v7263_v17 = vld [vmem:[%s9427_s1 + $0x840] sm:$0xff]  }
  0xae   :  { %6617 = vmatprep.subr.bf16.mxu1 %v7180_v21  ;;  %v62_v21 = vld [vmem:[%s9428_s0 + $0x148] sm:$0xff] }
  0xb0   :  { %6596 = vmatpush3.bf16.msra.mxu0 %v7181_v22  ;;  %v5811_v22 = vcombine.low %v34_v18, %v62_v21 }
  0xb1   :  { %6618 = vmatpush3.bf16.msra.mxu1 %v7182_v23  ;;  %6597 = vmatprep.subr.bf16.mxu0 %v7183_v24  ;;  %v5812_v23 = vcombine.high %v34_v18, %v62_v21  ;;  %v7231_v24 = vld [vmem:[%s9427_s1 + $0x740] sm:$0xff]   ;;  %v7267_v21 = vld [vmem:[%s9427_s1 + $0x848] sm:$0xff]  }
  0xb2   :  { %6619 = vmatprep.subr.bf16.mxu1 %v7184_v25  ;;  %v7232_v25 = vld [vmem:[%s9427_s1 + $0x7c0] sm:$0xff]  }
  0xb3   :  { %v7264_v18 = vld [vmem:[%s9427_s1 + $0x8c0] sm:$0xff]  }
  0xb4   :  { %6598 = vmatpush3.bf16.msra.mxu0 %v7185_v26  ;;  %v7233_v26 = vld [vmem:[%s9427_s1 + $0x700] sm:$0xff]  }
  0xb5   :  { %6620 = vmatpush3.bf16.msra.mxu1 %v7186_v27  ;;  %6599 = vmatprep.subr.bf16.mxu0 %v7187_v28  ;;  %v7234_v27 = vld [vmem:[%s9427_s1 + $0x780] sm:$0xff]   ;;  %v7235_v28 = vld [vmem:[%s9427_s1 + $0x748] sm:$0xff]  }
  0xb6   :  { %6621 = vmatprep.subr.bf16.mxu1 %v7188_v29  ;;  %v7236_v29 = vld [vmem:[%s9427_s1 + $0x7c8] sm:$0xff]  }
  0xb8   :  { %6600 = vmatpush3.bf16.msra.mxu0 %v7189_v30  ;;  %v7237_v30 = vld [vmem:[%s9427_s1 + $0x708] sm:$0xff]  }
  0xb9   :  { %6622 = vmatpush3.bf16.msra.mxu1 %v7190_v31  ;;  %6601 = vmatprep.subr.bf16.mxu0 %v7191_v32  ;;  %v7238_v31 = vld [vmem:[%s9427_s1 + $0x788] sm:$0xff]   ;;  %v7239_v32 = vld [vmem:[%s9427_s1 + $0x750] sm:$0xff]  }
  0xba   :  { %6623 = vmatprep.subr.bf16.mxu1 %v7192_v33  ;;  %v7240_v33 = vld [vmem:[%s9427_s1 + $0x7d0] sm:$0xff]  }
  0xbc   :  { %6602 = vmatpush3.bf16.msra.mxu0 %v7193_v34  ;;  %v7241_v34 = vld [vmem:[%s9427_s1 + $0x710] sm:$0xff]  }
  0xbd   :  { %6624 = vmatpush3.bf16.msra.mxu1 %v7194_v35  ;;  %6603 = vmatprep.subr.bf16.mxu0 %v7195_v36  ;;  %v7242_v35 = vld [vmem:[%s9427_s1 + $0x790] sm:$0xff]   ;;  %v7243_v36 = vld [vmem:[%s9427_s1 + $0x758] sm:$0xff]  }
  0xbe   :  { %6625 = vmatprep.subr.bf16.mxu1 %v7196_v37  ;;  %v7244_v37 = vld [vmem:[%s9427_s1 + $0x7d8] sm:$0xff]  }
  0xc0   :  { %6604 = vmatpush3.bf16.msra.mxu0 %v7197_v38 }
  0xc1   :  { %6626 = vmatpush3.bf16.msra.mxu1 %v7198_v39  ;;  %6633 = vmatprep.subr.bf16.mxu0 %v7199_v48  ;;  %v7245_v39 = vld [vmem:[%s9427_s1 + $0x718] sm:$0xff]  }
  0xc2   :  { %6655 = vmatprep.subr.bf16.mxu1 %v7200_v49  ;;  %v7249_v49 = vld [vmem:[%s9427_s1 + $0x720] sm:$0xff]  }
  0xc3   :  { %4391 = vmatmul.mubr.bf16.vlgmr.msra.gmra.mrb[20].mxu0 %v5805_v44 }
  0xc4   :  { %4432 = vmatmul.mubr.bf16.vlgmr.msra.gmra.mrb[20].mxu1 %v5807_v46  ;;  %6634 = vmatpush3.bf16.msra.mxu0 %v7201_v50  ;;  %v7248_v46 = vld [vmem:[%s9427_s1 + $0x7e0] sm:$0xff]  }
  0xc5   :  { %6656 = vmatpush3.bf16.msra.mxu1 %v7202_v51  ;;  %6635 = vmatprep.subr.bf16.mxu0 %v7203_v52  ;;  %v7250_v51 = vld [vmem:[%s9427_s1 + $0x7a0] sm:$0xff]  }
  0xc6   :  { %6657 = vmatprep.subr.bf16.mxu1 %v7204_v53  ;;  %4472 = vmatprep.mubr.bf16.mxu0 %v5810_v20  ;;  %v5784_v52 = vld [vmem:[%s9429_s2] ss:$0 sm:$0xff] }
  0xc7   :  { %4513 = vmatprep.mubr.bf16.mxu1 %v5812_v23  ;;  %v7266_v20 = vld [vmem:[%s9427_s1 + $0x880] sm:$0xff]   ;;  %v7269_v23 = vld [vmem:[%s9427_s1 + $0x808] sm:$0xff]  }
  0xc8   :  { %6636 = vmatpush3.bf16.msra.mxu0 %v7205_v54 }
  0xc9   :  { %6658 = vmatpush3.bf16.msra.mxu1 %v7206_v55  ;;  %6637 = vmatprep.subr.bf16.mxu0 %v7207_v56  ;;  %v7251_v55 = vld [vmem:[%s9427_s1 + $0x768] sm:$0xff]  }
  0xca   :  { %6659 = vmatprep.subr.bf16.mxu1 %v7208_v57 }
  0xcc   :  { %6638 = vmatpush3.bf16.msra.mxu0 %v7209_v58  ;;  %v7252_v58 = vld [vmem:[%s9427_s1 + $0x7e8] sm:$0xff]  }
  0xcd   :  { %6660 = vmatpush3.bf16.msra.mxu1 %v7210_v59  ;;  %6639 = vmatprep.subr.bf16.mxu0 %v7211_v60 }
  0xce   :  { %6661 = vmatprep.subr.bf16.mxu1 %v7212_v61  ;;  %v7253_v61 = vld [vmem:[%s9427_s1 + $0x728] sm:$0xff]  }
  0xd0   :  { %6640 = vmatpush3.bf16.msra.mxu0 %v7213_v62 }
  0xd1   :  { %6662 = vmatpush3.bf16.msra.mxu1 %v7214_v63  ;;  %6641 = vmatprep.subr.bf16.mxu0 %v7215_v0  ;;  %v7254_v63 = vld [vmem:[%s9427_s1 + $0x7a8] sm:$0xff]  }
  0xd2   :  { %6663 = vmatprep.subr.bf16.mxu1 %v7216_v1  ;;  %v7255_v1 = vld [vmem:[%s9427_s1 + $0x770] sm:$0xff]  }
  0xd4   :  { %6642 = vmatpush3.bf16.msra.mxu0 %v7217_v2  ;;  %v7256_v2 = vld [vmem:[%s9427_s1 + $0x7f0] sm:$0xff]  }
  0xd5   :  { %6664 = vmatpush3.bf16.msra.mxu1 %v7218_v3  ;;  %6643 = vmatprep.subr.bf16.mxu0 %v7219_v4  ;;  %v7257_v3 = vld [vmem:[%s9427_s1 + $0x730] sm:$0xff]  }
  0xd6   :  { %6665 = vmatprep.subr.bf16.mxu1 %v7220_v5  ;;  %v7258_v4 = vld [vmem:[%s9427_s1 + $0x7b0] sm:$0xff]   ;;  %v7259_v5 = vld [vmem:[%s9427_s1 + $0x778] sm:$0xff]  }
  0xd8   :  { %6644 = vmatpush3.bf16.msra.mxu0 %v7221_v6  ;;  %v7260_v6 = vld [vmem:[%s9427_s1 + $0x7f8] sm:$0xff]  }
  0xd9   :  { %6666 = vmatpush3.bf16.msra.mxu1 %v7222_v7  ;;  %6645 = vmatprep.subr.bf16.mxu0 %v7223_v8  ;;  %v7261_v7 = vld [vmem:[%s9427_s1 + $0x738] sm:$0xff]  }
  0xda   :  { %6667 = vmatprep.subr.bf16.mxu1 %v7224_v9  ;;  %v7262_v8 = vld [vmem:[%s9427_s1 + $0x7b8] sm:$0xff]   ;;  %v35_v9 = vld [vmem:[%s9428_s0 + $0x70] sm:$0xff] }
  0xdc   :  { %6646 = vmatpush3.bf16.msra.mxu0 %v7225_v10  ;;  %v63_v10 = vld [vmem:[%s9428_s0 + $0x150] sm:$0xff] }
  0xdd   :  { %6668 = vmatpush3.bf16.msra.mxu1 %v7226_v11  ;;  %6647 = vmatprep.subr.bf16.mxu0 %v7227_v12  ;;  %v36_v11 = vld [vmem:[%s9428_s0 + $0x78] sm:$0xff] }
  0xde   :  { %6669 = vmatprep.subr.bf16.mxu1 %v7228_v13  ;;  %v64_v12 = vld [vmem:[%s9428_s0 + $0x158] sm:$0xff]  ;;  %v5813_v13 = vcombine.low %v35_v9, %v63_v10 }
  0xdf   :  { %v5816_v16 = vcombine.high %v36_v11, %v64_v12 }
  0xe0   :  { %6648 = vmatpush3.bf16.msra.mxu0 %v7229_v14  ;;  %v5814_v14 = vcombine.high %v35_v9, %v63_v10  ;;  %v7295_v9 = vld [vmem:[%s9427_s1 + $0x940] sm:$0xff]  }
  0xe1   :  { %6670 = vmatpush3.bf16.msra.mxu1 %v7230_v15  ;;  %6677 = vmatprep.subr.bf16.mxu0 %v7231_v24  ;;  %v5815_v15 = vcombine.low %v36_v11, %v64_v12  ;;  %v7270_v24 = vld [vmem:[%s9427_s1 + $0x888] sm:$0xff]   ;;  %v7296_v10 = vld [vmem:[%s9427_s1 + $0x9c0] sm:$0xff]  }
  0xe2   :  { %6699 = vmatprep.subr.bf16.mxu1 %v7232_v25  ;;  %v7271_v25 = vld [vmem:[%s9427_s1 + $0x850] sm:$0xff]   ;;  %v7297_v11 = vld [vmem:[%s9427_s1 + $0x900] sm:$0xff]  }
  0xe3   :  { %4473 = vmatmul.mubr.bf16.vlgmr.msra.gmra.mrb[24].mxu0 %v5809_v19  ;;  %v7265_v19 = vld [vmem:[%s9427_s1 + $0x800] sm:$0xff]  }
  0xe4   :  { %4514 = vmatmul.mubr.bf16.vlgmr.msra.gmra.mrb[24].mxu1 %v5811_v22  ;;  %6678 = vmatpush3.bf16.msra.mxu0 %v7233_v26  ;;  %v7268_v22 = vld [vmem:[%s9427_s1 + $0x8c8] sm:$0xff]   ;;  %v7272_v26 = vld [vmem:[%s9427_s1 + $0x8d0] sm:$0xff]   ;;  %v7298_v12 = vld [vmem:[%s9427_s1 + $0x980] sm:$0xff]  }
  0xe5   :  { %6700 = vmatpush3.bf16.msra.mxu1 %v7234_v27  ;;  %6679 = vmatprep.subr.bf16.mxu0 %v7235_v28  ;;  %v7273_v27 = vld [vmem:[%s9427_s1 + $0x810] sm:$0xff]  }
  0xe6   :  { %6701 = vmatprep.subr.bf16.mxu1 %v7236_v29  ;;  %4554 = vmatprep.mubr.bf16.mxu0 %v5814_v14  ;;  %v7274_v28 = vld [vmem:[%s9427_s1 + $0x890] sm:$0xff]   ;;  %v7275_v29 = vld [vmem:[%s9427_s1 + $0x858] sm:$0xff]   ;;  %v7300_v14 = vld [vmem:[%s9427_s1 + $0x9c8] sm:$0xff]  }
  0xe7   :  { %4595 = vmatprep.mubr.bf16.mxu1 %v5816_v16  ;;  %v7302_v16 = vld [vmem:[%s9427_s1 + $0x988] sm:$0xff]  }
  0xe8   :  { %6680 = vmatpush3.bf16.msra.mxu0 %v7237_v30  ;;  %v7276_v30 = vld [vmem:[%s9427_s1 + $0x8d8] sm:$0xff]  }
  0xe9   :  { %6702 = vmatpush3.bf16.msra.mxu1 %v7238_v31  ;;  %6681 = vmatprep.subr.bf16.mxu0 %v7239_v32  ;;  %v7277_v32 = vld [vmem:[%s9427_s1 + $0x818] sm:$0xff]  }
  0xea   :  { %6703 = vmatprep.subr.bf16.mxu1 %v7240_v33 }
  0xec   :  { %6682 = vmatpush3.bf16.msra.mxu0 %v7241_v34  ;;  %v7278_v34 = vld [vmem:[%s9427_s1 + $0x898] sm:$0xff]  }
  0xed   :  { %6704 = vmatpush3.bf16.msra.mxu1 %v7242_v35  ;;  %6683 = vmatprep.subr.bf16.mxu0 %v7243_v36  ;;  %v7279_v36 = vld [vmem:[%s9427_s1 + $0x860] sm:$0xff]  }
  0xee   :  { %6705 = vmatprep.subr.bf16.mxu1 %v7244_v37 }
  0xf0   :  { %6684 = vmatpush3.bf16.msra.mxu0 %v7245_v39  ;;  %v7280_v39 = vld [vmem:[%s9427_s1 + $0x8e0] sm:$0xff]  }
  0xf1   :  { %6706 = vmatpush3.bf16.msra.mxu1 %v7246_v41  ;;  %6685 = vmatprep.subr.bf16.mxu0 %v7247_v43 }
  0xf2   :  { %6707 = vmatprep.subr.bf16.mxu1 %v7248_v46 }
  0xf4   :  { %6686 = vmatpush3.bf16.msra.mxu0 %v7249_v49 }
  0xf5   :  { %6708 = vmatpush3.bf16.msra.mxu1 %v7250_v51  ;;  %6687 = vmatprep.subr.bf16.mxu0 %v7251_v55  ;;  %v7284_v51 = vld [vmem:[%s9427_s1 + $0x8e8] sm:$0xff]  }
  0xf6   :  { %v6385_v38 = vpop.f32.mrb[0].mxu0  ;;  %6709 = vmatprep.subr.bf16.mxu1 %v7252_v58  ;;  %v7286_v55 = vld [vmem:[%s9427_s1 + $0x8a8] sm:$0xff]   ;;  %v7288_v58 = vld [vmem:[%s9427_s1 + $0x8f0] sm:$0xff]  }
  0xf7   :  { %v6407_v40 = vpop.f32.mrb[0].mxu1  ;;  %v6386_v42 = vpop.f32.mrb[1].mxu0 }
  0xf8   :  { %v6387_v44 = vadd.f32 %v6386_v42, %v6385_v38  ;;  %v6408_v45 = vpop.f32.mrb[1].mxu1  ;;  %v6388_v48 = vpop.f32.mrb[2].mxu0  ;;  %6688 = vmatpush3.bf16.msra.mxu0 %v7253_v61  ;;  %v7281_v42 = vld [vmem:[%s9427_s1 + $0x820] sm:$0xff]   ;;  %v7291_v61 = vld [vmem:[%s9427_s1 + $0x878] sm:$0xff]  }
  0xf9   :  { %v6409_v47 = vadd.f32 %v6408_v45, %v6407_v40  ;;  %v6410_v50 = vpop.f32.mrb[2].mxu1  ;;  %v6389_v53 = vpop.f32.mrb[3].mxu0  ;;  %6710 = vmatpush3.bf16.msra.mxu1 %v7254_v63  ;;  %6689 = vmatprep.subr.bf16.mxu0 %v7255_v1  ;;  %v7282_v45 = vld [vmem:[%s9427_s1 + $0x8a0] sm:$0xff]   ;;  %v7293_v63 = vld [vmem:[%s9427_s1 + $0x838] sm:$0xff]  }
  0xfa   :  { %v3983_v54 = vadd.f32 %v6387_v44, %v5784_v52  ;;  %v6390_v56 = vadd.f32 %v6389_v53, %v6388_v48  ;;  %v6411_v57 = vpop.f32.mrb[3].mxu1  ;;  %6711 = vmatprep.subr.bf16.mxu1 %v7256_v2  ;;  %v7283_v48 = vld [vmem:[%s9427_s1 + $0x868] sm:$0xff]   ;;  %v37_v1 = vld [vmem:[%s9428_s0 + $0x80] sm:$0xff] }
  0xfb   :  { %v6412_v59 = vadd.f32 %v6411_v57, %v6410_v50  ;;  %v7285_v53 = vld [vmem:[%s9427_s1 + $0x828] sm:$0xff]   ;;  %v7287_v57 = vld [vmem:[%s9427_s1 + $0x870] sm:$0xff]   ;;  %v65_v2 = vld [vmem:[%s9428_s0 + $0x160] sm:$0xff] }
  0xfc   :  { %v8422_v60 = vadd.f32 %v6409_v47, %v3983_v54  ;;  %v3986_v62 = vadd.f32 %v6390_v56, %v5784_v52  ;;  %6690 = vmatpush3.bf16.msra.mxu0 %v7257_v3  ;;  %v38_v3 = vld [vmem:[%s9428_s0 + $0x88] sm:$0xff] }
  0xfd   :  { %6712 = vmatpush3.bf16.msra.mxu1 %v7258_v4  ;;  %6691 = vmatprep.subr.bf16.mxu0 %v7259_v5  ;;  %v5817_v4 = vcombine.low %v37_v1, %v65_v2  ;;  %v5818_v5 = vcombine.high %v37_v1, %v65_v2  ;;  %v7327_v1 = vld [vmem:[%s9427_s1 + $0xa40] sm:$0xff]  }
  0xfe   :  { %v8430_v0 = vadd.f32 %v6412_v59, %v3986_v62  ;;  %6713 = vmatprep.subr.bf16.mxu1 %v7260_v6  ;;  %v7289_v59 = vld [vmem:[%s9427_s1 + $0x830] sm:$0xff]   ;;  %v7292_v62 = vld [vmem:[%s9427_s1 + $0x8f8] sm:$0xff]   ;;  %v66_v6 = vld [vmem:[%s9428_s0 + $0x168] sm:$0xff] }
  0xff   :  { %v7328_v2 = vld [vmem:[%s9427_s1 + $0xac0] sm:$0xff]  }
 0x100   :  { %6692 = vmatpush3.bf16.msra.mxu0 %v7261_v7  ;;  %v5819_v7 = vcombine.low %v38_v3, %v66_v6 }
 0x101   :  { %6714 = vmatpush3.bf16.msra.mxu1 %v7262_v8  ;;  %6721 = vmatprep.subr.bf16.mxu0 %v7263_v17  ;;  %v5820_v8 = vcombine.high %v38_v3, %v66_v6  ;;  %v7303_v17 = vld [vmem:[%s9427_s1 + $0x950] sm:$0xff]   ;;  %v7329_v3 = vld [vmem:[%s9427_s1 + $0xa00] sm:$0xff]   ;;  %v7332_v6 = vld [vmem:[%s9427_s1 + $0xac8] sm:$0xff]  }
 0x102   :  { %6743 = vmatprep.subr.bf16.mxu1 %v7264_v18  ;;  %v7304_v18 = vld [vmem:[%s9427_s1 + $0x9d0] sm:$0xff]  }
 0x103   :  { %4555 = vmatmul.mubr.bf16.vlgmr.msra.gmra.mrb[28].mxu0 %v5813_v13  ;;  %v7299_v13 = vld [vmem:[%s9427_s1 + $0x948] sm:$0xff]  }
 0x104   :  { %4596 = vmatmul.mubr.bf16.vlgmr.msra.gmra.mrb[28].mxu1 %v5815_v15  ;;  %6722 = vmatpush3.bf16.msra.mxu0 %v7265_v19  ;;  %v7301_v15 = vld [vmem:[%s9427_s1 + $0x908] sm:$0xff]   ;;  %v7305_v19 = vld [vmem:[%s9427_s1 + $0x910] sm:$0xff]  }
 0x105   :  { %6744 = vmatpush3.bf16.msra.mxu1 %v7266_v20  ;;  %6723 = vmatprep.subr.bf16.mxu0 %v7267_v21  ;;  %v7306_v20 = vld [vmem:[%s9427_s1 + $0x990] sm:$0xff]   ;;  %v7307_v21 = vld [vmem:[%s9427_s1 + $0x958] sm:$0xff]  }
 0x106   :  { %6745 = vmatprep.subr.bf16.mxu1 %v7268_v22  ;;  %4636 = vmatprep.mubr.bf16.mxu0 %v5818_v5  ;;  %v7308_v22 = vld [vmem:[%s9427_s1 + $0x9d8] sm:$0xff]   ;;  %v7331_v5 = vld [vmem:[%s9427_s1 + $0xa48] sm:$0xff]  }
 0x107   :  { %4677 = vmatprep.mubr.bf16.mxu1 %v5820_v8  ;;  %v7334_v8 = vld [vmem:[%s9427_s1 + $0xa88] sm:$0xff]  }
 0x108   :  { %6724 = vmatpush3.bf16.msra.mxu0 %v7269_v23 }
 0x109   :  { %6746 = vmatpush3.bf16.msra.mxu1 %v7270_v24  ;;  %6725 = vmatprep.subr.bf16.mxu0 %v7271_v25  ;;  %v7309_v24 = vld [vmem:[%s9427_s1 + $0x918] sm:$0xff]  }
 0x10a   :  { %6747 = vmatprep.subr.bf16.mxu1 %v7272_v26  ;;  %v7310_v26 = vld [vmem:[%s9427_s1 + $0x998] sm:$0xff]  }
 0x10c   :  { %6726 = vmatpush3.bf16.msra.mxu0 %v7273_v27 }
 0x10d   :  { %6748 = vmatpush3.bf16.msra.mxu1 %v7274_v28  ;;  %6727 = vmatprep.subr.bf16.mxu0 %v7275_v29  ;;  %v7311_v28 = vld [vmem:[%s9427_s1 + $0x960] sm:$0xff]  }
 0x10e   :  { %6749 = vmatprep.subr.bf16.mxu1 %v7276_v30 }
 0x110   :  { %6728 = vmatpush3.bf16.msra.mxu0 %v7277_v32 }
 0x111   :  { %6750 = vmatpush3.bf16.msra.mxu1 %v7278_v34  ;;  %6729 = vmatprep.subr.bf16.mxu0 %v7279_v36  ;;  %v7313_v34 = vld [vmem:[%s9427_s1 + $0x920] sm:$0xff]  }
 0x112   :  { %6751 = vmatprep.subr.bf16.mxu1 %v7280_v39 }
 0x114   :  { %6730 = vmatpush3.bf16.msra.mxu0 %v7281_v42 }
 0x115   :  { %6752 = vmatpush3.bf16.msra.mxu1 %v7282_v45  ;;  %6731 = vmatprep.subr.bf16.mxu0 %v7283_v48  ;;  %v7317_v45 = vld [vmem:[%s9427_s1 + $0x928] sm:$0xff]  }
 0x116   :  { %v6429_v31 = vpop.f32.mrb[4].mxu0  ;;  %6753 = vmatprep.subr.bf16.mxu1 %v7284_v51  ;;  %v7321_v51 = vld [vmem:[%s9427_s1 + $0x930] sm:$0xff]  }
 0x117   :  { %v6451_v33 = vpop.f32.mrb[4].mxu1  ;;  %v6430_v35 = vpop.f32.mrb[5].mxu0 }
 0x118   :  { %v6431_v37 = vadd.f32 %v6430_v35, %v6429_v31  ;;  %v6452_v38 = vpop.f32.mrb[5].mxu1  ;;  %v6432_v41 = vpop.f32.mrb[6].mxu0  ;;  %6732 = vmatpush3.bf16.msra.mxu0 %v7285_v53  ;;  %v7312_v31 = vld [vmem:[%s9427_s1 + $0x9e0] sm:$0xff]   ;;  %v7323_v53 = vld [vmem:[%s9427_s1 + $0x978] sm:$0xff]  }
 0x119   :  { %v6453_v40 = vadd.f32 %v6452_v38, %v6451_v33  ;;  %v6454_v44 = vpop.f32.mrb[6].mxu1  ;;  %v6433_v46 = vpop.f32.mrb[7].mxu0  ;;  %6754 = vmatpush3.bf16.msra.mxu1 %v7286_v55  ;;  %6733 = vmatprep.subr.bf16.mxu0 %v7287_v57  ;;  %v7325_v55 = vld [vmem:[%s9427_s1 + $0x938] sm:$0xff]   ;;  %v39_v57 = vld [vmem:[%s9428_s0 + $0x90] sm:$0xff] }
 0x11a   :  { %v4065_v43 = vadd.f32 %v6431_v37, %v8422_v60  ;;  %v6434_v49 = vadd.f32 %v6433_v46, %v6432_v41  ;;  %v6455_v50 = vpop.f32.mrb[7].mxu1  ;;  %6755 = vmatprep.subr.bf16.mxu1 %v7288_v58  ;;  %v7290_v60 = vld [vmem:[%s9427_s1 + $0x8b0] sm:$0xff]   ;;  %v7314_v37 = vld [vmem:[%s9427_s1 + $0x9a0] sm:$0xff]  }
 0x11b   :  { %v6456_v52 = vadd.f32 %v6455_v50, %v6454_v44  ;;  %v7320_v50 = vld [vmem:[%s9427_s1 + $0x9f0] sm:$0xff]  }
 0x11c   :  { %v8529_v47 = vadd.f32 %v6453_v40, %v4065_v43  ;;  %v4068_v54 = vadd.f32 %v6434_v49, %v8430_v0  ;;  %6734 = vmatpush3.bf16.msra.mxu0 %v7289_v59  ;;  %v7294_v0 = vld [vmem:[%s9427_s1 + $0x8b8] sm:$0xff]   ;;  %v7315_v40 = vld [vmem:[%s9427_s1 + $0x968] sm:$0xff]   ;;  %v7319_v49 = vld [vmem:[%s9427_s1 + $0x970] sm:$0xff]  }
 0x11d   :  { %6756 = vmatpush3.bf16.msra.mxu1 %v7290_v60  ;;  %6735 = vmatprep.subr.bf16.mxu0 %v7291_v61  ;;  %v7316_v43 = vld [vmem:[%s9427_s1 + $0x9e8] sm:$0xff]   ;;  %v67_v58 = vld [vmem:[%s9428_s0 + $0x170] sm:$0xff]  ;;  %v40_v61 = vld [vmem:[%s9428_s0 + $0x98] sm:$0xff] }
 0x11e   :  { %v8544_v56 = vadd.f32 %v6456_v52, %v4068_v54  ;;  %6757 = vmatprep.subr.bf16.mxu1 %v7292_v62  ;;  %v7322_v52 = vld [vmem:[%s9427_s1 + $0x9b0] sm:$0xff]   ;;  %v7324_v54 = vld [vmem:[%s9427_s1 + $0x9f8] sm:$0xff]   ;;  %v5821_v59 = vcombine.low %v39_v57, %v67_v58  ;;  %v5822_v60 = vcombine.high %v39_v57, %v67_v58  ;;  %v7359_v57 = vld [vmem:[%s9427_s1 + $0xb40] sm:$0xff]  }
 0x11f   :  { %v68_v62 = vld [vmem:[%s9428_s0 + $0x178] sm:$0xff]  ;;  %v7360_v58 = vld [vmem:[%s9427_s1 + $0xbc0] sm:$0xff]  }
 0x120   :  { %6736 = vmatpush3.bf16.msra.mxu0 %v7293_v63  ;;  %v5823_v63 = vcombine.low %v40_v61, %v68_v62 }
 0x121   :  { %6758 = vmatpush3.bf16.msra.mxu1 %v7294_v0  ;;  %6765 = vmatprep.subr.bf16.mxu0 %v7295_v9  ;;  %v5824_v0 = vcombine.high %v40_v61, %v68_v62  ;;  %v7335_v9 = vld [vmem:[%s9427_s1 + $0xa50] sm:$0xff]   ;;  %v7363_v61 = vld [vmem:[%s9427_s1 + $0xb48] sm:$0xff]  }
 0x122   :  { %6787 = vmatprep.subr.bf16.mxu1 %v7296_v10  ;;  %v7336_v10 = vld [vmem:[%s9427_s1 + $0xad0] sm:$0xff]   ;;  %v7364_v62 = vld [vmem:[%s9427_s1 + $0xbc8] sm:$0xff]  }
 0x123   :  { %4637 = vmatmul.mubr.bf16.vlgmr.msra.gmra.mrb[32].mxu0 %v5817_v4  ;;  %v7330_v4 = vld [vmem:[%s9427_s1 + $0xa80] sm:$0xff]  }
 0x124   :  { %4678 = vmatmul.mubr.bf16.vlgmr.msra.gmra.mrb[32].mxu1 %v5819_v7  ;;  %6766 = vmatpush3.bf16.msra.mxu0 %v7297_v11  ;;  %v7333_v7 = vld [vmem:[%s9427_s1 + $0xa08] sm:$0xff]   ;;  %v7337_v11 = vld [vmem:[%s9427_s1 + $0xa10] sm:$0xff]  }
 0x125   :  { %6788 = vmatpush3.bf16.msra.mxu1 %v7298_v12  ;;  %6767 = vmatprep.subr.bf16.mxu0 %v7299_v13  ;;  %v7338_v12 = vld [vmem:[%s9427_s1 + $0xa90] sm:$0xff]   ;;  %v7339_v13 = vld [vmem:[%s9427_s1 + $0xa58] sm:$0xff]  }
 0x126   :  { %6789 = vmatprep.subr.bf16.mxu1 %v7300_v14  ;;  %4718 = vmatprep.mubr.bf16.mxu0 %v5822_v60  ;;  %v7340_v14 = vld [vmem:[%s9427_s1 + $0xad8] sm:$0xff]   ;;  %v7362_v60 = vld [vmem:[%s9427_s1 + $0xb80] sm:$0xff]  }
 0x127   :  { %4759 = vmatprep.mubr.bf16.mxu1 %v5824_v0  ;;  %v7366_v0 = vld [vmem:[%s9427_s1 + $0xb88] sm:$0xff]  }
 0x128   :  { %6768 = vmatpush3.bf16.msra.mxu0 %v7301_v15 }
 0x129   :  { %6790 = vmatpush3.bf16.msra.mxu1 %v7302_v16  ;;  %6769 = vmatprep.subr.bf16.mxu0 %v7303_v17  ;;  %v7341_v16 = vld [vmem:[%s9427_s1 + $0xa18] sm:$0xff]  }
 0x12a   :  { %6791 = vmatprep.subr.bf16.mxu1 %v7304_v18  ;;  %v7342_v18 = vld [vmem:[%s9427_s1 + $0xa98] sm:$0xff]  }
 0x12c   :  { %6770 = vmatpush3.bf16.msra.mxu0 %v7305_v19 }
 0x12d   :  { %6792 = vmatpush3.bf16.msra.mxu1 %v7306_v20  ;;  %6771 = vmatprep.subr.bf16.mxu0 %v7307_v21  ;;  %v7343_v20 = vld [vmem:[%s9427_s1 + $0xa60] sm:$0xff]  }
 0x12e   :  { %6793 = vmatprep.subr.bf16.mxu1 %v7308_v22 }
 0x130   :  { %6772 = vmatpush3.bf16.msra.mxu0 %v7309_v24 }
 0x131   :  { %6794 = vmatpush3.bf16.msra.mxu1 %v7310_v26  ;;  %6773 = vmatprep.subr.bf16.mxu0 %v7311_v28  ;;  %v7345_v26 = vld [vmem:[%s9427_s1 + $0xa20] sm:$0xff]  }
 0x132   :  { %6795 = vmatprep.subr.bf16.mxu1 %v7312_v31 }
 0x134   :  { %6774 = vmatpush3.bf16.msra.mxu0 %v7313_v34 }
 0x135   :  { %6796 = vmatpush3.bf16.msra.mxu1 %v7314_v37  ;;  %6775 = vmatprep.subr.bf16.mxu0 %v7315_v40  ;;  %v7349_v37 = vld [vmem:[%s9427_s1 + $0xa28] sm:$0xff]  }
 0x136   :  { %v6473_v23 = vpop.f32.mrb[8].mxu0  ;;  %6797 = vmatprep.subr.bf16.mxu1 %v7316_v43  ;;  %v7353_v43 = vld [vmem:[%s9427_s1 + $0xa30] sm:$0xff]  }
 0x137   :  { %v6495_v25 = vpop.f32.mrb[8].mxu1  ;;  %v6474_v27 = vpop.f32.mrb[9].mxu0 }
 0x138   :  { %v6475_v29 = vadd.f32 %v6474_v27, %v6473_v23  ;;  %v6496_v30 = vpop.f32.mrb[9].mxu1  ;;  %v6476_v33 = vpop.f32.mrb[10].mxu0  ;;  %6776 = vmatpush3.bf16.msra.mxu0 %v7317_v45  ;;  %v7344_v23 = vld [vmem:[%s9427_s1 + $0xae0] sm:$0xff]   ;;  %v7355_v45 = vld [vmem:[%s9427_s1 + $0xa78] sm:$0xff]  }
 0x139   :  { %v6497_v32 = vadd.f32 %v6496_v30, %v6495_v25  ;;  %v6498_v36 = vpop.f32.mrb[10].mxu1  ;;  %v6477_v38 = vpop.f32.mrb[11].mxu0  ;;  %6777 = vmatprep.subr.bf16.mxu0 %v7319_v49  ;;  %v41_v49 = vld [vmem:[%s9428_s0 + $0xa0] sm:$0xff] }
 0x13a   :  { %v4147_v35 = vadd.f32 %v6475_v29, %v8529_v47  ;;  %v6478_v41 = vadd.f32 %v6477_v38, %v6476_v33  ;;  %v6499_v42 = vpop.f32.mrb[11].mxu1  ;;  %v7318_v47 = vld [vmem:[%s9427_s1 + $0x9a8] sm:$0xff]   ;;  %v7346_v29 = vld [vmem:[%s9427_s1 + $0xaa0] sm:$0xff]  }
 0x13b   :  { %v6500_v44 = vadd.f32 %v6499_v42, %v6498_v36  ;;  %6798 = vmatpush3.bf16.msra.mxu1 %v7318_v47  ;;  %v7352_v42 = vld [vmem:[%s9427_s1 + $0xaf0] sm:$0xff]   ;;  %v7357_v47 = vld [vmem:[%s9427_s1 + $0xa38] sm:$0xff]  }
 0x13c   :  { %v8643_v39 = vadd.f32 %v6497_v32, %v4147_v35  ;;  %v4150_v46 = vadd.f32 %v6478_v41, %v8544_v56  ;;  %6799 = vmatprep.subr.bf16.mxu1 %v7320_v50  ;;  %6778 = vmatpush3.bf16.msra.mxu0 %v7321_v51  ;;  %v7326_v56 = vld [vmem:[%s9427_s1 + $0x9b8] sm:$0xff]   ;;  %v7347_v32 = vld [vmem:[%s9427_s1 + $0xa68] sm:$0xff]   ;;  %v7351_v41 = vld [vmem:[%s9427_s1 + $0xa70] sm:$0xff]  }
 0x13d   :  { %6779 = vmatprep.subr.bf16.mxu0 %v7323_v53  ;;  %v7348_v35 = vld [vmem:[%s9427_s1 + $0xae8] sm:$0xff]   ;;  %v69_v50 = vld [vmem:[%s9428_s0 + $0x180] sm:$0xff] }
 0x13e   :  { %v8658_v48 = vadd.f32 %v6500_v44, %v4150_v46  ;;  %v7354_v44 = vld [vmem:[%s9427_s1 + $0xab0] sm:$0xff]   ;;  %v7356_v46 = vld [vmem:[%s9427_s1 + $0xaf8] sm:$0xff]   ;;  %v42_v51 = vld [vmem:[%s9428_s0 + $0xa8] sm:$0xff]  ;;  %v5825_v53 = vcombine.low %v41_v49, %v69_v50 }
 0x13f   :  { %6800 = vmatpush3.bf16.msra.mxu1 %v7322_v52  ;;  %v70_v52 = vld [vmem:[%s9428_s0 + $0x188] sm:$0xff] }
 0x140   :  { %6801 = vmatprep.subr.bf16.mxu1 %v7324_v54  ;;  %6780 = vmatpush3.bf16.msra.mxu0 %v7325_v55  ;;  %v5826_v54 = vcombine.high %v41_v49, %v69_v50  ;;  %v5827_v55 = vcombine.low %v42_v51, %v70_v52  ;;  %v7391_v49 = vld [vmem:[%s9427_s1 + $0xc40] sm:$0xff]  }
 0x141   :  { %6809 = vmatprep.subr.bf16.mxu0 %v7327_v1  ;;  %v7367_v1 = vld [vmem:[%s9427_s1 + $0xb50] sm:$0xff]   ;;  %v7392_v50 = vld [vmem:[%s9427_s1 + $0xcc0] sm:$0xff]  }
 0x143   :  { %6802 = vmatpush3.bf16.msra.mxu1 %v7326_v56  ;;  %4719 = vmatmul.mubr.bf16.vlgmr.msra.gmra.mrb[36].mxu0 %v5821_v59  ;;  %v5828_v56 = vcombine.high %v42_v51, %v70_v52  ;;  %v7361_v59 = vld [vmem:[%s9427_s1 + $0xb00] sm:$0xff]  }
 0x144   :  { %6831 = vmatprep.subr.bf16.mxu1 %v7328_v2  ;;  %6810 = vmatpush3.bf16.msra.mxu0 %v7329_v3  ;;  %v7368_v2 = vld [vmem:[%s9427_s1 + $0xbd0] sm:$0xff]   ;;  %v7393_v51 = vld [vmem:[%s9427_s1 + $0xc00] sm:$0xff]  }
 0x145   :  { %6811 = vmatprep.subr.bf16.mxu0 %v7331_v5  ;;  %4800 = vmatprep.mubr.bf16.mxu0 %v5826_v54  ;;  %v7369_v3 = vld [vmem:[%s9427_s1 + $0xb10] sm:$0xff]   ;;  %v7371_v5 = vld [vmem:[%s9427_s1 + $0xb58] sm:$0xff]   ;;  %v7394_v52 = vld [vmem:[%s9427_s1 + $0xc80] sm:$0xff]  }
 0x146   :  { %4760 = vmatmul.mubr.bf16.vlgmr.msra.gmra.mrb[36].mxu1 %v5823_v63  ;;  %v7365_v63 = vld [vmem:[%s9427_s1 + $0xb08] sm:$0xff]  }
 0x147   :  { %6832 = vmatpush3.bf16.msra.mxu1 %v7330_v4  ;;  %4841 = vmatprep.mubr.bf16.mxu1 %v5828_v56  ;;  %v7370_v4 = vld [vmem:[%s9427_s1 + $0xb90] sm:$0xff]   ;;  %v7396_v54 = vld [vmem:[%s9427_s1 + $0xcc8] sm:$0xff]  }
 0x148   :  { %6833 = vmatprep.subr.bf16.mxu1 %v7332_v6  ;;  %6812 = vmatpush3.bf16.msra.mxu0 %v7333_v7  ;;  %v7372_v6 = vld [vmem:[%s9427_s1 + $0xbd8] sm:$0xff]   ;;  %v7398_v56 = vld [vmem:[%s9427_s1 + $0xc88] sm:$0xff]  }
 0x149   :  { %6813 = vmatprep.subr.bf16.mxu0 %v7335_v9 }
 0x14b   :  { %6834 = vmatpush3.bf16.msra.mxu1 %v7334_v8  ;;  %v7373_v8 = vld [vmem:[%s9427_s1 + $0xb18] sm:$0xff]  }
 0x14c   :  { %6835 = vmatprep.subr.bf16.mxu1 %v7336_v10  ;;  %6814 = vmatpush3.bf16.msra.mxu0 %v7337_v11  ;;  %v7374_v10 = vld [vmem:[%s9427_s1 + $0xb98] sm:$0xff]  }
 0x14d   :  { %6815 = vmatprep.subr.bf16.mxu0 %v7339_v13 }
 0x14f   :  { %6836 = vmatpush3.bf16.msra.mxu1 %v7338_v12  ;;  %v7375_v12 = vld [vmem:[%s9427_s1 + $0xb60] sm:$0xff]  }
 0x150   :  { %6837 = vmatprep.subr.bf16.mxu1 %v7340_v14  ;;  %6816 = vmatpush3.bf16.msra.mxu0 %v7341_v16 }
 0x151   :  { %6817 = vmatprep.subr.bf16.mxu0 %v7343_v20 }
 0x153   :  { %6838 = vmatpush3.bf16.msra.mxu1 %v7342_v18  ;;  %v7377_v18 = vld [vmem:[%s9427_s1 + $0xb20] sm:$0xff]  }
 0x154   :  { %6839 = vmatprep.subr.bf16.mxu1 %v7344_v23  ;;  %6818 = vmatpush3.bf16.msra.mxu0 %v7345_v26 }
 0x155   :  { %6819 = vmatprep.subr.bf16.mxu0 %v7347_v32 }
 0x156   :  { %v6517_v15 = vpop.f32.mrb[12].mxu0 }
 0x157   :  { %v6539_v17 = vpop.f32.mrb[12].mxu1  ;;  %v6518_v19 = vpop.f32.mrb[13].mxu0  ;;  %6840 = vmatpush3.bf16.msra.mxu1 %v7346_v29  ;;  %v7381_v29 = vld [vmem:[%s9427_s1 + $0xb28] sm:$0xff]  }
 0x158   :  { %v6519_v21 = vadd.f32 %v6518_v19, %v6517_v15  ;;  %v6540_v22 = vpop.f32.mrb[13].mxu1  ;;  %v6520_v25 = vpop.f32.mrb[14].mxu0  ;;  %6841 = vmatprep.subr.bf16.mxu1 %v7348_v35  ;;  %6820 = vmatpush3.bf16.msra.mxu0 %v7349_v37  ;;  %v7376_v15 = vld [vmem:[%s9427_s1 + $0xbe0] sm:$0xff]   ;;  %v7385_v35 = vld [vmem:[%s9427_s1 + $0xb30] sm:$0xff]   ;;  %v7387_v37 = vld [vmem:[%s9427_s1 + $0xb78] sm:$0xff]  }
 0x159   :  { %v6541_v24 = vadd.f32 %v6540_v22, %v6539_v17  ;;  %v6542_v28 = vpop.f32.mrb[14].mxu1  ;;  %v6521_v30 = vpop.f32.mrb[15].mxu0  ;;  %6821 = vmatprep.subr.bf16.mxu0 %v7351_v41  ;;  %v43_v41 = vld [vmem:[%s9428_s0 + $0xb0] sm:$0xff] }
 0x15a   :  { %v4229_v27 = vadd.f32 %v6519_v21, %v8643_v39  ;;  %v6522_v33 = vadd.f32 %v6521_v30, %v6520_v25  ;;  %v6543_v34 = vpop.f32.mrb[15].mxu1  ;;  %v7350_v39 = vld [vmem:[%s9427_s1 + $0xaa8] sm:$0xff]   ;;  %v7378_v21 = vld [vmem:[%s9427_s1 + $0xba0] sm:$0xff]  }
 0x15b   :  { %v6544_v36 = vadd.f32 %v6543_v34, %v6542_v28  ;;  %6842 = vmatpush3.bf16.msra.mxu1 %v7350_v39  ;;  %v7384_v34 = vld [vmem:[%s9427_s1 + $0xbf0] sm:$0xff]   ;;  %v7389_v39 = vld [vmem:[%s9427_s1 + $0xb38] sm:$0xff]  }
 0x15c   :  { %v8757_v31 = vadd.f32 %v6541_v24, %v4229_v27  ;;  %v4232_v38 = vadd.f32 %v6522_v33, %v8658_v48  ;;  %6843 = vmatprep.subr.bf16.mxu1 %v7352_v42  ;;  %6822 = vmatpush3.bf16.msra.mxu0 %v7353_v43  ;;  %v7358_v48 = vld [vmem:[%s9427_s1 + $0xab8] sm:$0xff]   ;;  %v7379_v24 = vld [vmem:[%s9427_s1 + $0xb68] sm:$0xff]   ;;  %v7383_v33 = vld [vmem:[%s9427_s1 + $0xb70] sm:$0xff]  }
 0x15d   :  { %6823 = vmatprep.subr.bf16.mxu0 %v7355_v45  ;;  %v7380_v27 = vld [vmem:[%s9427_s1 + $0xbe8] sm:$0xff]   ;;  %v71_v42 = vld [vmem:[%s9428_s0 + $0x190] sm:$0xff]  ;;  %v44_v43 = vld [vmem:[%s9428_s0 + $0xb8] sm:$0xff] }
 0x15e   :  { %v8772_v40 = vadd.f32 %v6544_v36, %v4232_v38  ;;  %v7386_v36 = vld [vmem:[%s9427_s1 + $0xbb0] sm:$0xff]   ;;  %v7388_v38 = vld [vmem:[%s9427_s1 + $0xbf8] sm:$0xff]   ;;  %v5830_v45 = vcombine.high %v43_v41, %v71_v42 }
 0x15f   :  { %6844 = vmatpush3.bf16.msra.mxu1 %v7354_v44  ;;  %v5829_v44 = vcombine.low %v43_v41, %v71_v42  ;;  %v7423_v41 = vld [vmem:[%s9427_s1 + $0xd40] sm:$0xff]  }
 0x160   :  { %6845 = vmatprep.subr.bf16.mxu1 %v7356_v46  ;;  %6824 = vmatpush3.bf16.msra.mxu0 %v7357_v47  ;;  %v72_v46 = vld [vmem:[%s9428_s0 + $0x198] sm:$0xff]  ;;  %v7424_v42 = vld [vmem:[%s9427_s1 + $0xdc0] sm:$0xff]  }
 0x161   :  { %6853 = vmatprep.subr.bf16.mxu0 %v7359_v57  ;;  %v5831_v47 = vcombine.low %v44_v43, %v72_v46  ;;  %v7399_v57 = vld [vmem:[%s9427_s1 + $0xc50] sm:$0xff]  }
 0x163   :  { %6846 = vmatpush3.bf16.msra.mxu1 %v7358_v48  ;;  %4801 = vmatmul.mubr.bf16.vlgmr.msra.gmra.mrb[40].mxu0 %v5825_v53  ;;  %v5832_v48 = vcombine.high %v44_v43, %v72_v46  ;;  %v7395_v53 = vld [vmem:[%s9427_s1 + $0xc48] sm:$0xff]   ;;  %v7425_v43 = vld [vmem:[%s9427_s1 + $0xd00] sm:$0xff]  }
 0x164   :  { %6875 = vmatprep.subr.bf16.mxu1 %v7360_v58  ;;  %6854 = vmatpush3.bf16.msra.mxu0 %v7361_v59  ;;  %v7400_v58 = vld [vmem:[%s9427_s1 + $0xcd0] sm:$0xff]   ;;  %v7428_v46 = vld [vmem:[%s9427_s1 + $0xdc8] sm:$0xff]  }
 0x165   :  { %6855 = vmatprep.subr.bf16.mxu0 %v7363_v61  ;;  %4882 = vmatprep.mubr.bf16.mxu0 %v5830_v45  ;;  %v7401_v59 = vld [vmem:[%s9427_s1 + $0xc10] sm:$0xff]   ;;  %v7403_v61 = vld [vmem:[%s9427_s1 + $0xc58] sm:$0xff]   ;;  %v7427_v45 = vld [vmem:[%s9427_s1 + $0xd48] sm:$0xff]  }
 0x166   :  { %4842 = vmatmul.mubr.bf16.vlgmr.msra.gmra.mrb[40].mxu1 %v5827_v55  ;;  %v7397_v55 = vld [vmem:[%s9427_s1 + $0xc08] sm:$0xff]  }
 0x167   :  { %6876 = vmatpush3.bf16.msra.mxu1 %v7362_v60  ;;  %4923 = vmatprep.mubr.bf16.mxu1 %v5832_v48  ;;  %v7402_v60 = vld [vmem:[%s9427_s1 + $0xc90] sm:$0xff]   ;;  %v7430_v48 = vld [vmem:[%s9427_s1 + $0xd88] sm:$0xff]  }
 0x168   :  { %6877 = vmatprep.subr.bf16.mxu1 %v7364_v62  ;;  %6856 = vmatpush3.bf16.msra.mxu0 %v7365_v63  ;;  %v7404_v62 = vld [vmem:[%s9427_s1 + $0xcd8] sm:$0xff]  }
 0x169   :  { %6857 = vmatprep.subr.bf16.mxu0 %v7367_v1 }
 0x16b   :  { %6878 = vmatpush3.bf16.msra.mxu1 %v7366_v0  ;;  %v7405_v0 = vld [vmem:[%s9427_s1 + $0xc18] sm:$0xff]  }
 0x16c   :  { %6879 = vmatprep.subr.bf16.mxu1 %v7368_v2  ;;  %6858 = vmatpush3.bf16.msra.mxu0 %v7369_v3  ;;  %v7406_v2 = vld [vmem:[%s9427_s1 + $0xc98] sm:$0xff]  }
 0x16d   :  { %6859 = vmatprep.subr.bf16.mxu0 %v7371_v5 }
 0x16f   :  { %6880 = vmatpush3.bf16.msra.mxu1 %v7370_v4  ;;  %v7407_v4 = vld [vmem:[%s9427_s1 + $0xc60] sm:$0xff]  }
 0x170   :  { %6881 = vmatprep.subr.bf16.mxu1 %v7372_v6  ;;  %6860 = vmatpush3.bf16.msra.mxu0 %v7373_v8 }
 0x171   :  { %6861 = vmatprep.subr.bf16.mxu0 %v7375_v12 }
 0x173   :  { %6882 = vmatpush3.bf16.msra.mxu1 %v7374_v10  ;;  %v7409_v10 = vld [vmem:[%s9427_s1 + $0xc20] sm:$0xff]  }
 0x174   :  { %6883 = vmatprep.subr.bf16.mxu1 %v7376_v15  ;;  %6862 = vmatpush3.bf16.msra.mxu0 %v7377_v18 }
 0x175   :  { %6863 = vmatprep.subr.bf16.mxu0 %v7379_v24 }
 0x176   :  { %v6561_v7 = vpop.f32.mrb[16].mxu0 }
 0x177   :  { %v6583_v9 = vpop.f32.mrb[16].mxu1  ;;  %v6562_v11 = vpop.f32.mrb[17].mxu0  ;;  %6884 = vmatpush3.bf16.msra.mxu1 %v7378_v21  ;;  %v7413_v21 = vld [vmem:[%s9427_s1 + $0xc28] sm:$0xff]  }
 0x178   :  { %v6563_v13 = vadd.f32 %v6562_v11, %v6561_v7  ;;  %v6584_v14 = vpop.f32.mrb[17].mxu1  ;;  %v6564_v17 = vpop.f32.mrb[18].mxu0  ;;  %6885 = vmatprep.subr.bf16.mxu1 %v7380_v27  ;;  %6864 = vmatpush3.bf16.msra.mxu0 %v7381_v29  ;;  %v7408_v7 = vld [vmem:[%s9427_s1 + $0xce0] sm:$0xff]   ;;  %v7417_v27 = vld [vmem:[%s9427_s1 + $0xc30] sm:$0xff]   ;;  %v7419_v29 = vld [vmem:[%s9427_s1 + $0xc78] sm:$0xff]  }
 0x179   :  { %v6585_v16 = vadd.f32 %v6584_v14, %v6583_v9  ;;  %v6586_v20 = vpop.f32.mrb[18].mxu1  ;;  %v6565_v22 = vpop.f32.mrb[19].mxu0  ;;  %6865 = vmatprep.subr.bf16.mxu0 %v7383_v33  ;;  %v45_v33 = vld [vmem:[%s9428_s0 + $0xc0] sm:$0xff] }
 0x17a   :  { %v4311_v19 = vadd.f32 %v6563_v13, %v8757_v31  ;;  %v6566_v25 = vadd.f32 %v6565_v22, %v6564_v17  ;;  %v6587_v26 = vpop.f32.mrb[19].mxu1  ;;  %v7382_v31 = vld [vmem:[%s9427_s1 + $0xba8] sm:$0xff]   ;;  %v7410_v13 = vld [vmem:[%s9427_s1 + $0xca0] sm:$0xff]  }
 0x17b   :  { %v6588_v28 = vadd.f32 %v6587_v26, %v6586_v20  ;;  %6886 = vmatpush3.bf16.msra.mxu1 %v7382_v31  ;;  %v7416_v26 = vld [vmem:[%s9427_s1 + $0xcf0] sm:$0xff]   ;;  %v7421_v31 = vld [vmem:[%s9427_s1 + $0xc38] sm:$0xff]  }
 0x17c   :  { %v8871_v23 = vadd.f32 %v6585_v16, %v4311_v19  ;;  %v4314_v30 = vadd.f32 %v6566_v25, %v8772_v40  ;;  %6887 = vmatprep.subr.bf16.mxu1 %v7384_v34  ;;  %6866 = vmatpush3.bf16.msra.mxu0 %v7385_v35  ;;  %v7390_v40 = vld [vmem:[%s9427_s1 + $0xbb8] sm:$0xff]   ;;  %v7411_v16 = vld [vmem:[%s9427_s1 + $0xc68] sm:$0xff]   ;;  %v7415_v25 = vld [vmem:[%s9427_s1 + $0xc70] sm:$0xff]  }
 0x17d   :  { %6867 = vmatprep.subr.bf16.mxu0 %v7387_v37  ;;  %v7412_v19 = vld [vmem:[%s9427_s1 + $0xce8] sm:$0xff]   ;;  %v73_v34 = vld [vmem:[%s9428_s0 + $0x1a0] sm:$0xff] }
 0x17e   :  { %v8886_v32 = vadd.f32 %v6588_v28, %v4314_v30  ;;  %v7418_v28 = vld [vmem:[%s9427_s1 + $0xcb0] sm:$0xff]   ;;  %v7420_v30 = vld [vmem:[%s9427_s1 + $0xcf8] sm:$0xff]   ;;  %v5833_v35 = vcombine.low %v45_v33, %v73_v34  ;;  %v46_v37 = vld [vmem:[%s9428_s0 + $0xc8] sm:$0xff] }
 0x17f   :  { %6888 = vmatpush3.bf16.msra.mxu1 %v7386_v36  ;;  %v5834_v36 = vcombine.high %v45_v33, %v73_v34 }
 0x180   :  { %6889 = vmatprep.subr.bf16.mxu1 %v7388_v38  ;;  %6868 = vmatpush3.bf16.msra.mxu0 %v7389_v39  ;;  %v74_v38 = vld [vmem:[%s9428_s0 + $0x1a8] sm:$0xff] }
 0x181   :  { %6897 = vmatprep.subr.bf16.mxu0 %v7391_v49  ;;  %v5835_v39 = vcombine.low %v46_v37, %v74_v38  ;;  %v7431_v49 = vld [vmem:[%s9427_s1 + $0xd50] sm:$0xff]  }
 0x183   :  { %6890 = vmatpush3.bf16.msra.mxu1 %v7390_v40  ;;  %4883 = vmatmul.mubr.bf16.vlgmr.msra.gmra.mrb[44].mxu0 %v5829_v44  ;;  %v5836_v40 = vcombine.high %v46_v37, %v74_v38  ;;  %v7426_v44 = vld [vmem:[%s9427_s1 + $0xd80] sm:$0xff]  }
 0x184   :  { %6919 = vmatprep.subr.bf16.mxu1 %v7392_v50  ;;  %6898 = vmatpush3.bf16.msra.mxu0 %v7393_v51  ;;  %v7432_v50 = vld [vmem:[%s9427_s1 + $0xdd0] sm:$0xff]  }
 0x185   :  { %6899 = vmatprep.subr.bf16.mxu0 %v7395_v53  ;;  %4964 = vmatprep.mubr.bf16.mxu0 %v5834_v36  ;;  %v7433_v51 = vld [vmem:[%s9427_s1 + $0xd10] sm:$0xff]   ;;  %v7435_v53 = vld [vmem:[%s9427_s1 + $0xd58] sm:$0xff]  }
 0x186   :  { %4924 = vmatmul.mubr.bf16.vlgmr.msra.gmra.mrb[44].mxu1 %v5831_v47  ;;  %v7429_v47 = vld [vmem:[%s9427_s1 + $0xd08] sm:$0xff]  }
 0x187   :  { %6920 = vmatpush3.bf16.msra.mxu1 %v7394_v52  ;;  %5005 = vmatprep.mubr.bf16.mxu1 %v5836_v40  ;;  %v7434_v52 = vld [vmem:[%s9427_s1 + $0xd90] sm:$0xff]  }
 0x188   :  { %6921 = vmatprep.subr.bf16.mxu1 %v7396_v54  ;;  %6900 = vmatpush3.bf16.msra.mxu0 %v7397_v55  ;;  %v7436_v54 = vld [vmem:[%s9427_s1 + $0xdd8] sm:$0xff]  }
 0x189   :  { %6901 = vmatprep.subr.bf16.mxu0 %v7399_v57 }
 0x18b   :  { %6922 = vmatpush3.bf16.msra.mxu1 %v7398_v56  ;;  %v7437_v56 = vld [vmem:[%s9427_s1 + $0xd18] sm:$0xff]  }
 0x18c   :  { %6923 = vmatprep.subr.bf16.mxu1 %v7400_v58  ;;  %6902 = vmatpush3.bf16.msra.mxu0 %v7401_v59  ;;  %v7438_v58 = vld [vmem:[%s9427_s1 + $0xd98] sm:$0xff]  }
 0x18d   :  { %6903 = vmatprep.subr.bf16.mxu0 %v7403_v61 }
 0x18f   :  { %6924 = vmatpush3.bf16.msra.mxu1 %v7402_v60  ;;  %v7439_v60 = vld [vmem:[%s9427_s1 + $0xd60] sm:$0xff]  }
 0x190   :  { %6925 = vmatprep.subr.bf16.mxu1 %v7404_v62  ;;  %6904 = vmatpush3.bf16.msra.mxu0 %v7405_v0 }
 0x191   :  { %6905 = vmatprep.subr.bf16.mxu0 %v7407_v4 }
 0x193   :  { %6926 = vmatpush3.bf16.msra.mxu1 %v7406_v2  ;;  %v7441_v2 = vld [vmem:[%s9427_s1 + $0xd20] sm:$0xff]  }
 0x194   :  { %6927 = vmatprep.subr.bf16.mxu1 %v7408_v7  ;;  %6906 = vmatpush3.bf16.msra.mxu0 %v7409_v10 }
 0x195   :  { %6907 = vmatprep.subr.bf16.mxu0 %v7411_v16 }
 0x196   :  { %v6605_v63 = vpop.f32.mrb[20].mxu0 }
 0x197   :  { %v6627_v1 = vpop.f32.mrb[20].mxu1  ;;  %v6606_v3 = vpop.f32.mrb[21].mxu0  ;;  %6928 = vmatpush3.bf16.msra.mxu1 %v7410_v13  ;;  %v7445_v13 = vld [vmem:[%s9427_s1 + $0xd28] sm:$0xff]  }
 0x198   :  { %v6607_v5 = vadd.f32 %v6606_v3, %v6605_v63  ;;  %v6628_v6 = vpop.f32.mrb[21].mxu1  ;;  %v6608_v9 = vpop.f32.mrb[22].mxu0  ;;  %6929 = vmatprep.subr.bf16.mxu1 %v7412_v19  ;;  %6908 = vmatpush3.bf16.msra.mxu0 %v7413_v21  ;;  %v7440_v63 = vld [vmem:[%s9427_s1 + $0xde0] sm:$0xff]   ;;  %v7449_v19 = vld [vmem:[%s9427_s1 + $0xd30] sm:$0xff]   ;;  %v7451_v21 = vld [vmem:[%s9427_s1 + $0xd78] sm:$0xff]  }
 0x199   :  { %v6629_v8 = vadd.f32 %v6628_v6, %v6627_v1  ;;  %v6630_v12 = vpop.f32.mrb[22].mxu1  ;;  %v6609_v14 = vpop.f32.mrb[23].mxu0  ;;  %6909 = vmatprep.subr.bf16.mxu0 %v7415_v25  ;;  %v47_v25 = vld [vmem:[%s9428_s0 + $0xd0] sm:$0xff] }
 0x19a   :  { %v4393_v11 = vadd.f32 %v6607_v5, %v8871_v23  ;;  %v6610_v17 = vadd.f32 %v6609_v14, %v6608_v9  ;;  %v6631_v18 = vpop.f32.mrb[23].mxu1  ;;  %v7414_v23 = vld [vmem:[%s9427_s1 + $0xca8] sm:$0xff]   ;;  %v7442_v5 = vld [vmem:[%s9427_s1 + $0xda0] sm:$0xff]  }
 0x19b   :  { %v6632_v20 = vadd.f32 %v6631_v18, %v6630_v12  ;;  %6930 = vmatpush3.bf16.msra.mxu1 %v7414_v23  ;;  %v7448_v18 = vld [vmem:[%s9427_s1 + $0xdf0] sm:$0xff]   ;;  %v7453_v23 = vld [vmem:[%s9427_s1 + $0xd38] sm:$0xff]  }
 0x19c   :  { %v8985_v15 = vadd.f32 %v6629_v8, %v4393_v11  ;;  %v4396_v22 = vadd.f32 %v6610_v17, %v8886_v32  ;;  %6931 = vmatprep.subr.bf16.mxu1 %v7416_v26  ;;  %6910 = vmatpush3.bf16.msra.mxu0 %v7417_v27  ;;  %v7422_v32 = vld [vmem:[%s9427_s1 + $0xcb8] sm:$0xff]   ;;  %v7443_v8 = vld [vmem:[%s9427_s1 + $0xd68] sm:$0xff]   ;;  %v7447_v17 = vld [vmem:[%s9427_s1 + $0xd70] sm:$0xff]  }
 0x19d   :  { %6911 = vmatprep.subr.bf16.mxu0 %v7419_v29  ;;  %v7444_v11 = vld [vmem:[%s9427_s1 + $0xde8] sm:$0xff]   ;;  %v75_v26 = vld [vmem:[%s9428_s0 + $0x1b0] sm:$0xff]  ;;  %v48_v27 = vld [vmem:[%s9428_s0 + $0xd8] sm:$0xff] }
 0x19e   :  { %v9000_v24 = vadd.f32 %v6632_v20, %v4396_v22  ;;  %v7450_v20 = vld [vmem:[%s9427_s1 + $0xdb0] sm:$0xff]   ;;  %v7452_v22 = vld [vmem:[%s9427_s1 + $0xdf8] sm:$0xff]   ;;  %v5837_v29 = vcombine.low %v47_v25, %v75_v26 }
 0x19f   :  { %6932 = vmatpush3.bf16.msra.mxu1 %v7418_v28  ;;  %v76_v28 = vld [vmem:[%s9428_s0 + $0x1b8] sm:$0xff] }
 0x1a0   :  { %6933 = vmatprep.subr.bf16.mxu1 %v7420_v30  ;;  %6912 = vmatpush3.bf16.msra.mxu0 %v7421_v31  ;;  %v5838_v30 = vcombine.high %v47_v25, %v75_v26  ;;  %v5839_v31 = vcombine.low %v48_v27, %v76_v28  ;;  %v7491_v25 = vld [vmem:[%s9430_s3 + $0xf0] ss:$20 sps:$4 sm:$0xff]   ;;  %v7493_v26 = vld [vmem:[%s9430_s3 + $0xf4] ss:$20 sps:$4 sm:$0xff]  }
 0x1a1   :  { %6941 = vmatprep.subr.bf16.mxu0 %v7423_v41 }
 0x1a3   :  { %6934 = vmatpush3.bf16.msra.mxu1 %v7422_v32  ;;  %4965 = vmatmul.mubr.bf16.vlgmr.msra.gmra.mrb[48].mxu0 %v5833_v35  ;;  %v5840_v32 = vcombine.high %v48_v27, %v76_v28  ;;  %v7494_v27 = vld [vmem:[%s9430_s3 + $0xf8] ss:$20 sps:$4 sm:$0xff]   ;;  %v7496_v28 = vld [vmem:[%s9430_s3 + $0xfc] ss:$20 sps:$4 sm:$0xff]  }
 0x1a4   :  { %6963 = vmatprep.subr.bf16.mxu1 %v7424_v42  ;;  %6942 = vmatpush3.bf16.msra.mxu0 %v7425_v43 }
 0x1a5   :  { %6943 = vmatprep.subr.bf16.mxu0 %v7427_v45  ;;  %5046 = vmatprep.mubr.bf16.mxu0 %v5838_v30  ;;  %v7502_v30 = vld [vmem:[%s9430_s3 + $0x124] ss:$20 sps:$4 sm:$0xff]  }
 0x1a6   :  { %5006 = vmatmul.mubr.bf16.vlgmr.msra.gmra.mrb[48].mxu1 %v5835_v39 }
 0x1a7   :  { %6964 = vmatpush3.bf16.msra.mxu1 %v7426_v44  ;;  %5087 = vmatprep.mubr.bf16.mxu1 %v5840_v32  ;;  %v7500_v32 = vld [vmem:[%s9430_s3 + $0x120] ss:$20 sps:$4 sm:$0xff]  }
 0x1a8   :  { %6965 = vmatprep.subr.bf16.mxu1 %v7428_v46  ;;  %6944 = vmatpush3.bf16.msra.mxu0 %v7429_v47 }
 0x1a9   :  { %6945 = vmatprep.subr.bf16.mxu0 %v7431_v49  ;;  %v7455_v49 = vld [vmem:[%s9430_s3] ss:$20 sps:$4 sm:$0xff]  }
 0x1ab   :  { %6966 = vmatpush3.bf16.msra.mxu1 %v7430_v48 }
 0x1ac   :  { %6967 = vmatprep.subr.bf16.mxu1 %v7432_v50  ;;  %6946 = vmatpush3.bf16.msra.mxu0 %v7433_v51  ;;  %v7457_v50 = vld [vmem:[%s9430_s3 + $0x4] ss:$20 sps:$4 sm:$0xff]   ;;  %v7458_v51 = vld [vmem:[%s9430_s3 + $0x8] ss:$20 sps:$4 sm:$0xff]  }
 0x1ad   :  { %6947 = vmatprep.subr.bf16.mxu0 %v7435_v53  ;;  %v7461_v53 = vld [vmem:[%s9430_s3 + $0x28] ss:$20 sps:$4 sm:$0xff]  }
 0x1af   :  { %6968 = vmatpush3.bf16.msra.mxu1 %v7434_v52  ;;  %v7460_v52 = vld [vmem:[%s9430_s3 + $0xc] ss:$20 sps:$4 sm:$0xff]  }
 0x1b0   :  { %6969 = vmatprep.subr.bf16.mxu1 %v7436_v54  ;;  %6948 = vmatpush3.bf16.msra.mxu0 %v7437_v56  ;;  %v7463_v54 = vld [vmem:[%s9430_s3 + $0x2c] ss:$20 sps:$4 sm:$0xff]   ;;  %v7466_v56 = vld [vmem:[%s9430_s3 + $0x34] ss:$20 sps:$4 sm:$0xff]  }
 0x1b1   :  { %6949 = vmatprep.subr.bf16.mxu0 %v7439_v60  ;;  %v7470_v60 = vld [vmem:[%s9430_s3 + $0x58] ss:$20 sps:$4 sm:$0xff]  }
 0x1b3   :  { %6970 = vmatpush3.bf16.msra.mxu1 %v7438_v58  ;;  %v7467_v58 = vld [vmem:[%s9430_s3 + $0x50] ss:$20 sps:$4 sm:$0xff]  }
 0x1b4   :  { %6971 = vmatprep.subr.bf16.mxu1 %v7440_v63  ;;  %6950 = vmatpush3.bf16.msra.mxu0 %v7441_v2  ;;  %v7478_v63 = vld [vmem:[%s9430_s3 + $0x84] ss:$20 sps:$4 sm:$0xff]  }
 0x1b5   :  { %6951 = vmatprep.subr.bf16.mxu0 %v7443_v8 }
 0x1b6   :  { %v6649_v55 = vpop.f32.mrb[24].mxu0 }
 0x1b7   :  { %v6671_v57 = vpop.f32.mrb[24].mxu1  ;;  %v6650_v59 = vpop.f32.mrb[25].mxu0  ;;  %6972 = vmatpush3.bf16.msra.mxu1 %v7442_v5 }
 0x1b8   :  { %v6651_v61 = vadd.f32 %v6650_v59, %v6649_v55  ;;  %v6672_v62 = vpop.f32.mrb[25].mxu1  ;;  %v6652_v1 = vpop.f32.mrb[26].mxu0  ;;  %6973 = vmatprep.subr.bf16.mxu1 %v7444_v11  ;;  %6952 = vmatpush3.bf16.msra.mxu0 %v7445_v13  ;;  %v7464_v55 = vld [vmem:[%s9430_s3 + $0x30] ss:$20 sps:$4 sm:$0xff]  }
 0x1b9   :  { %v6673_v0 = vadd.f32 %v6672_v62, %v6671_v57  ;;  %v6674_v4 = vpop.f32.mrb[26].mxu1  ;;  %v6653_v6 = vpop.f32.mrb[27].mxu0  ;;  %6953 = vmatprep.subr.bf16.mxu0 %v7447_v17  ;;  %v7469_v57 = vld [vmem:[%s9430_s3 + $0x54] ss:$20 sps:$4 sm:$0xff]   ;;  %v7472_v59 = vld [vmem:[%s9430_s3 + $0x5c] ss:$20 sps:$4 sm:$0xff]  }
 0x1ba   :  { %v4475_v3 = vadd.f32 %v6651_v61, %v8985_v15  ;;  %v6654_v9 = vadd.f32 %v6653_v6, %v6652_v1  ;;  %v6675_v10 = vpop.f32.mrb[27].mxu1  ;;  %v7446_v15 = vld [vmem:[%s9427_s1 + $0xda8] sm:$0xff]   ;;  %v7475_v61 = vld [vmem:[%s9430_s3 + $0x7c] ss:$20 sps:$4 sm:$0xff]   ;;  %v7479_v17 = vld [vmem:[%s9430_s3 + $0xa0] ss:$20 sps:$4 sm:$0xff]  }
 0x1bb   :  { %v6676_v12 = vadd.f32 %v6675_v10, %v6674_v4  ;;  %6974 = vmatpush3.bf16.msra.mxu1 %v7446_v15  ;;  %v7473_v62 = vld [vmem:[%s9430_s3 + $0x78] ss:$20 sps:$4 sm:$0xff]  }
 0x1bc   :  { %v4516_v7 = vadd.f32 %v6673_v0, %v4475_v3  ;;  %v4478_v14 = vadd.f32 %v6654_v9, %v9000_v24  ;;  %6975 = vmatprep.subr.bf16.mxu1 %v7448_v18  ;;  %6954 = vmatpush3.bf16.msra.mxu0 %v7449_v19  ;;  %v7454_v24 = vld [vmem:[%s9427_s1 + $0xdb8] sm:$0xff]   ;;  %v7476_v0 = vld [vmem:[%s9430_s3 + $0x80] ss:$20 sps:$4 sm:$0xff]  }
 0x1bd   :  { %6955 = vmatprep.subr.bf16.mxu0 %v7451_v21  ;;  %v7484_v18 = vld [vmem:[%s9430_s3 + $0xac] ss:$20 sps:$4 sm:$0xff]   ;;  %v7482_v19 = vld [vmem:[%s9430_s3 + $0xa8] ss:$20 sps:$4 sm:$0xff]  }
 0x1be   :  { %v4519_v16 = vadd.f32 %v6676_v12, %v4478_v14  ;;  %v7481_v14 = vld [vmem:[%s9430_s3 + $0xa4] ss:$20 sps:$4 sm:$0xff]   ;;  %v7487_v21 = vld [vmem:[%s9430_s3 + $0xcc] ss:$20 sps:$4 sm:$0xff]  }
 0x1bf   :  { %6976 = vmatpush3.bf16.msra.mxu1 %v7450_v20 }
 0x1c0   :  { %6977 = vmatprep.subr.bf16.mxu1 %v7452_v22  ;;  %6956 = vmatpush3.bf16.msra.mxu0 %v7453_v23  ;;  %v7485_v22 = vld [vmem:[%s9430_s3 + $0xc8] ss:$20 sps:$4 sm:$0xff]  }
 0x1c1   :  { %5643 = vmatprep.subr.bf16.mxu0 %v7457_v50  ;;  %v7490_v23 = vld [vmem:[%s9430_s3 + $0xd4] ss:$20 sps:$4 sm:$0xff]  }
 0x1c3   :  { %6978 = vmatpush3.bf16.msra.mxu1 %v7454_v24  ;;  %5047 = vmatmul.mubr.bf16.vlgmr.msra.gmra.mrb[52].mxu0 %v5837_v29  ;;  %v7488_v24 = vld [vmem:[%s9430_s3 + $0xd0] ss:$20 sps:$4 sm:$0xff]  }
 0x1c4   :  { %5644 = vmatpush1.bf16.msra.mxu0 %v7455_v49  ;;  %5686 = vmatprep.subr.bf16.mxu1 %v7460_v52  ;;  %v7499_v29 = vld [vmem:[%s9430_s3 + $0x11c] ss:$20 sps:$4 sm:$0xff]   ;;  %v7524_v49 = vld [vmem:[%s9430_s3 + $0x1c0] ss:$20 sps:$4 sm:$0xff]  }
 0x1c5   :  { %5645 = vmatprep.subr.bf16.mxu0 %v7463_v54 }
 0x1c6   :  { %5088 = vmatmul.mubr.bf16.vlgmr.msra.gmra.mrb[52].mxu1 %v5839_v31  ;;  %v7497_v31 = vld [vmem:[%s9430_s3 + $0x118] ss:$20 sps:$4 sm:$0xff]  }
 0x1c7   :  { %5687 = vmatpush1.bf16.msra.mxu1 %v7458_v51 }
 0x1c8   :  { %5688 = vmatprep.subr.bf16.mxu1 %v7466_v56  ;;  %5646 = vmatpush1.bf16.msra.mxu0 %v7461_v53 }
 0x1c9   :  { %5647 = vmatprep.subr.bf16.mxu0 %v7469_v57 }
 0x1cb   :  { %5689 = vmatpush1.bf16.msra.mxu1 %v7464_v55 }
 0x1cc   :  { %5690 = vmatprep.subr.bf16.mxu1 %v7472_v59  ;;  %5648 = vmatpush1.bf16.msra.mxu0 %v7467_v58 }
 0x1cd   :  { %5649 = vmatprep.subr.bf16.mxu0 %v7475_v61  ;;  %v7529_v61 = vld [vmem:[%s9430_s3 + $0x1e4] ss:$20 sps:$4 sm:$0xff]  }
 0x1cf   :  { %5691 = vmatpush1.bf16.msra.mxu1 %v7470_v60 }
 0x1d0   :  { %5692 = vmatprep.subr.bf16.mxu1 %v7478_v63  ;;  %5650 = vmatpush1.bf16.msra.mxu0 %v7473_v62  ;;  %v7527_v63 = vld [vmem:[%s9430_s3 + $0x1e0] ss:$20 sps:$4 sm:$0xff]  }
 0x1d1   :  { %5651 = vmatprep.subr.bf16.mxu0 %v7481_v14  ;;  %v7545_v14 = vld [vmem:[%s9430_s3 + $0x258] ss:$20 sps:$4 sm:$0xff]  }
 0x1d3   :  { %5693 = vmatpush1.bf16.msra.mxu1 %v7476_v0  ;;  %v7532_v0 = vld [vmem:[%s9430_s3 + $0x1ec] ss:$20 sps:$4 sm:$0xff]  }
 0x1d4   :  { %5652 = vmatpush1.bf16.msra.mxu0 %v7479_v17  ;;  %5694 = vmatprep.subr.bf16.mxu1 %v7484_v18  ;;  %v7551_v17 = vld [vmem:[%s9430_s3 + $0x150] ss:$20 sps:$4 sm:$0xff]  }
 0x1d5   :  { %5653 = vmatprep.subr.bf16.mxu0 %v7487_v21 }
 0x1d6   :  { %v6693_v33 = vpop.f32.mrb[28].mxu0 }
 0x1d7   :  { %v6715_v34 = vpop.f32.mrb[28].mxu1  ;;  %v6694_v35 = vpop.f32.mrb[29].mxu0  ;;  %5695 = vmatpush1.bf16.msra.mxu1 %v7482_v19 }
 0x1d8   :  { %v6716_v36 = vpop.f32.mrb[29].mxu1  ;;  %v6695_v37 = vadd.f32 %v6694_v35, %v6693_v33  ;;  %v6696_v39 = vpop.f32.mrb[30].mxu0  ;;  %5654 = vmatpush1.bf16.msra.mxu0 %v7485_v22  ;;  %5696 = vmatprep.subr.bf16.mxu1 %v7490_v23  ;;  %v7505_v33 = vld [vmem:[%s9430_s3 + $0x144] ss:$20 sps:$4 sm:$0xff]   ;;  %v7503_v35 = vld [vmem:[%s9430_s3 + $0x140] ss:$20 sps:$4 sm:$0xff]  }
 0x1d9   :  { %v6717_v38 = vadd.f32 %v6716_v36, %v6715_v34  ;;  %v6718_v40 = vpop.f32.mrb[30].mxu1  ;;  %v6697_v41 = vpop.f32.mrb[31].mxu0  ;;  %5655 = vmatprep.subr.bf16.mxu0 %v7493_v26  ;;  %v7508_v34 = vld [vmem:[%s9430_s3 + $0x14c] ss:$20 sps:$4 sm:$0xff]   ;;  %v7506_v36 = vld [vmem:[%s9430_s3 + $0x148] ss:$20 sps:$4 sm:$0xff]  }
 0x1da   :  { %v6719_v42 = vpop.f32.mrb[31].mxu1  ;;  %v4557_v43 = vadd.f32 %v6695_v37, %v4516_v7  ;;  %v6698_v44 = vadd.f32 %v6697_v41, %v6696_v39  ;;  %v7511_v37 = vld [vmem:[%s9430_s3 + $0x16c] ss:$20 sps:$4 sm:$0xff]   ;;  %v7509_v39 = vld [vmem:[%s9430_s3 + $0x168] ss:$20 sps:$4 sm:$0xff]  }
 0x1db   :  { %v6720_v45 = vadd.f32 %v6719_v42, %v6718_v40  ;;  %5697 = vmatpush1.bf16.msra.mxu1 %v7488_v24  ;;  %v7512_v40 = vld [vmem:[%s9430_s3 + $0x170] ss:$20 sps:$4 sm:$0xff]   ;;  %v7517_v41 = vld [vmem:[%s9430_s3 + $0x194] ss:$20 sps:$4 sm:$0xff]  }
 0x1dc   :  { %v4598_v46 = vadd.f32 %v6717_v38, %v4557_v43  ;;  %v4560_v47 = vadd.f32 %v6698_v44, %v4519_v16  ;;  %5656 = vmatpush1.bf16.msra.mxu0 %v7491_v25  ;;  %5698 = vmatprep.subr.bf16.mxu1 %v7496_v28  ;;  %v7514_v38 = vld [vmem:[%s9430_s3 + $0x174] ss:$20 sps:$4 sm:$0xff]   ;;  %v7520_v42 = vld [vmem:[%s9430_s3 + $0x19c] ss:$20 sps:$4 sm:$0xff]   ;;  %v7518_v44 = vld [vmem:[%s9430_s3 + $0x198] ss:$20 sps:$4 sm:$0xff]  }
 0x1dd   :  { %5657 = vmatprep.subr.bf16.mxu0 %v7499_v29  ;;  %v7515_v43 = vld [vmem:[%s9430_s3 + $0x190] ss:$20 sps:$4 sm:$0xff]  }
 0x1de   :  { %v4601_v48 = vadd.f32 %v6720_v45, %v4560_v47  ;;  %v7523_v45 = vld [vmem:[%s9430_s3 + $0x1bc] ss:$20 sps:$4 sm:$0xff]   ;;  %v7521_v47 = vld [vmem:[%s9430_s3 + $0x1b8] ss:$20 sps:$4 sm:$0xff]  }
 0x1df   :  { %5699 = vmatpush1.bf16.msra.mxu1 %v7494_v27 }
 0x1e0   :  { %5700 = vmatprep.subr.bf16.mxu1 %v7502_v30  ;;  %5658 = vmatpush1.bf16.msra.mxu0 %v7497_v31 }
 0x1e1   :  { %5659 = vmatprep.subr.bf16.mxu0 %v7505_v33 }
 0x1e3   :  { %5701 = vmatpush1.bf16.msra.mxu1 %v7500_v32 }
 0x1e4   :  { %5702 = vmatprep.subr.bf16.mxu1 %v7508_v34  ;;  %5660 = vmatpush1.bf16.msra.mxu0 %v7503_v35 }
 0x1e5   :  { %5661 = vmatprep.subr.bf16.mxu0 %v7511_v37 }
 0x1e7   :  { %5703 = vmatpush1.bf16.msra.mxu1 %v7506_v36 }
 0x1e8   :  { %5704 = vmatprep.subr.bf16.mxu1 %v7514_v38  ;;  %5662 = vmatpush1.bf16.msra.mxu0 %v7509_v39 }
 0x1e9   :  { %5663 = vmatprep.subr.bf16.mxu0 %v7517_v41 }
 0x1eb   :  { %5705 = vmatpush1.bf16.msra.mxu1 %v7512_v40 }
 0x1ec   :  { %5706 = vmatprep.subr.bf16.mxu1 %v7520_v42  ;;  %5664 = vmatpush1.bf16.msra.mxu0 %v7515_v43 }
 0x1ed   :  { %5665 = vmatprep.subr.bf16.mxu0 %v7523_v45 }
 0x1ef   :  { %5707 = vmatpush1.bf16.msra.mxu1 %v7518_v44 }
 0x1f0   :  { %5666 = vmatpush1.bf16.msra.mxu0 %v7521_v47 }
 0x1f1   :  { %5667 = vmatprep.subr.bf16.mxu0 %v7529_v61 }
 0x1f4   :  { %5668 = vmatpush1.bf16.msra.mxu0 %v7527_v63 }
 0x1f6   :  { %v6737_v1 = vpop.f32.mrb[32].mxu0 }
 0x1f7   :  { %v6759_v2 = vpop.f32.mrb[32].mxu1  ;;  %v6738_v3 = vpop.f32.mrb[33].mxu0 }
 0x1f8   :  { %v6739_v4 = vadd.f32 %v6738_v3, %v6737_v1  ;;  %v6760_v5 = vpop.f32.mrb[33].mxu1  ;;  %v6740_v6 = vpop.f32.mrb[34].mxu0  ;;  %v7530_v3 = vld [vmem:[%s9430_s3 + $0x1e8] ss:$20 sps:$4 sm:$0xff]  }
 0x1f9   :  { %v6761_v7 = vadd.f32 %v6760_v5, %v6759_v2  ;;  %v6762_v8 = vpop.f32.mrb[34].mxu1  ;;  %v6741_v9 = vpop.f32.mrb[35].mxu0  ;;  %v7535_v5 = vld [vmem:[%s9430_s3 + $0x20c] ss:$20 sps:$4 sm:$0xff]  }
 0x1fa   :  { %v4639_v10 = vadd.f32 %v6739_v4, %v4598_v46  ;;  %v6742_v11 = vadd.f32 %v6741_v9, %v6740_v6  ;;  %v6763_v12 = vpop.f32.mrb[35].mxu1  ;;  %v7526_v46 = vld [vmem:[%s9430_s3 + $0x1c4] ss:$20 sps:$4 sm:$0xff]   ;;  %v7533_v6 = vld [vmem:[%s9430_s3 + $0x208] ss:$20 sps:$4 sm:$0xff]   ;;  %5669 = vmatprep.subr.bf16.mxu0 %v7535_v5 }
 0x1fb   :  { %v6764_v13 = vadd.f32 %v6763_v12, %v6762_v8  ;;  %5708 = vmatprep.subr.bf16.mxu1 %v7526_v46  ;;  %v7536_v8 = vld [vmem:[%s9430_s3 + $0x210] ss:$20 sps:$4 sm:$0xff]   ;;  %5670 = vmatpush1.bf16.msra.mxu0 %v7533_v6  ;;  %v7541_v9 = vld [vmem:[%s9430_s3 + $0x234] ss:$20 sps:$4 sm:$0xff]   ;;  %v7542_v12 = vld [vmem:[%s9430_s3 + $0x238] ss:$20 sps:$4 sm:$0xff]  }
 0x1fc   :  { %v9199_v15 = vadd.f32 %v6761_v7, %v4639_v10  ;;  %v4642_v16 = vadd.f32 %v6742_v11, %v4601_v48  ;;  %5709 = vmatpush1.bf16.msra.mxu1 %v7524_v49  ;;  %v7538_v7 = vld [vmem:[%s9430_s3 + $0x214] ss:$20 sps:$4 sm:$0xff]   ;;  %v7539_v10 = vld [vmem:[%s9430_s3 + $0x230] ss:$20 sps:$4 sm:$0xff]   ;;  %5671 = vmatprep.subr.bf16.mxu0 %v7541_v9 }
 0x1fd   :  { %5710 = vmatprep.subr.bf16.mxu1 %v7532_v0  ;;  %v7544_v11 = vld [vmem:[%s9430_s3 + $0x23c] ss:$20 sps:$4 sm:$0xff]  }
 0x1fe   :  { %v9210_v20 = vadd.f32 %v6764_v13, %v4642_v16  ;;  %v7547_v13 = vld [vmem:[%s9430_s3 + $0x25c] ss:$20 sps:$4 sm:$0xff]   ;;  %v7548_v16 = vld [vmem:[%s9430_s3 + $0x260] ss:$20 sps:$4 sm:$0xff]  }
 0x1ff   :  { %5672 = vmatpush1.bf16.msra.mxu0 %v7539_v10 }
 0x200   :  { %5711 = vmatpush1.bf16.msra.mxu1 %v7530_v3  ;;  %5673 = vmatprep.subr.bf16.mxu0 %v7547_v13 }
 0x201   :  { %5712 = vmatprep.subr.bf16.mxu1 %v7538_v7 }
 0x203   :  { %5674 = vmatpush1.bf16.msra.mxu0 %v7545_v14 }
 0x204   :  { %5713 = vmatpush1.bf16.msra.mxu1 %v7536_v8  ;;  %6985 = vmatprep.subr.bf16.mxu0 %v7551_v17 }
 0x205   :  { %5714 = vmatprep.subr.bf16.mxu1 %v7544_v11 }
 0x208   :  { %5715 = vmatpush1.bf16.msra.mxu1 %v7542_v12 }
 0x216   :  { %v6781_v48 = vpop.f32.mrb[36].mxu0 }
 0x217   :  { %v6782_v51 = vpop.f32.mrb[37].mxu0 }
 0x218   :  { %v6783_v52 = vadd.f32 %v6782_v51, %v6781_v48  ;;  %v6784_v54 = vpop.f32.mrb[38].mxu0 }
 0x219   :  { %v6803_v50 = vpop.f32.mrb[36].mxu1  ;;  %v6785_v57 = vpop.f32.mrb[39].mxu0 }
 0x21a   :  { %v6804_v53 = vpop.f32.mrb[37].mxu1  ;;  %v4721_v58 = vadd.f32 %v6783_v52, %v9199_v15  ;;  %v6786_v59 = vadd.f32 %v6785_v57, %v6784_v54  ;;  %v7550_v15 = vld [vmem:[%s9430_s3 + $0x264] ss:$20 sps:$4 sm:$0xff]  }
 0x21b   :  { %v6805_v55 = vadd.f32 %v6804_v53, %v6803_v50  ;;  %v6806_v56 = vpop.f32.mrb[38].mxu1  ;;  %5716 = vmatprep.subr.bf16.mxu1 %v7550_v15 }
 0x21c   :  { %v6807_v60 = vpop.f32.mrb[39].mxu1  ;;  %v4724_v2 = vadd.f32 %v6786_v59, %v9210_v20  ;;  %5717 = vmatpush1.bf16.msra.mxu1 %v7548_v16 }
 0x21d   :  { %v6808_v62 = vadd.f32 %v6807_v60, %v6806_v56  ;;  %v4762_v1 = vadd.f32 %v6805_v55, %v4721_v58 }
 0x21f   :  { %v4765_v4 = vadd.f32 %v6808_v62, %v4724_v2 }
 0x236   :  { %v6825_v18 = vpop.f32.mrb[40].mxu0 }
 0x237   :  { %v6826_v20 = vpop.f32.mrb[41].mxu0 }
 0x238   :  { %v6827_v22 = vadd.f32 %v6826_v20, %v6825_v18  ;;  %v6828_v24 = vpop.f32.mrb[42].mxu0 }
 0x239   :  { %v6847_v19 = vpop.f32.mrb[40].mxu1  ;;  %v6829_v26 = vpop.f32.mrb[43].mxu0 }
 0x23a   :  { %v6848_v21 = vpop.f32.mrb[41].mxu1  ;;  %v4803_v28 = vadd.f32 %v6827_v22, %v4762_v1  ;;  %v6830_v29 = vadd.f32 %v6829_v26, %v6828_v24  ;;  %v7552_v26 = vld [vmem:[%s9430_s3 + $0x10] ss:$20 sps:$4 sm:$0xff]  }
 0x23b   :  { %v6849_v23 = vadd.f32 %v6848_v21, %v6847_v19  ;;  %v6850_v25 = vpop.f32.mrb[42].mxu1 }
 0x23c   :  { %v6851_v27 = vpop.f32.mrb[43].mxu1  ;;  %v4806_v32 = vadd.f32 %v6830_v29, %v4765_v4  ;;  %v7555_v29 = vld [vmem:[%s9430_s3 + $0x1a0] ss:$20 sps:$4 sm:$0xff]  }
 0x23d   :  { %v6852_v30 = vadd.f32 %v6851_v27, %v6850_v25  ;;  %v4844_v31 = vadd.f32 %v6849_v23, %v4803_v28  ;;  %v7553_v27 = vld [vmem:[%s9430_s3 + $0x178] ss:$20 sps:$4 sm:$0xff]  }
 0x23e   :  { %v7554_v28 = vld [vmem:[%s9430_s3 + $0x38] ss:$20 sps:$4 sm:$0xff]  }
 0x23f   :  { %v4847_v33 = vadd.f32 %v6852_v30, %v4806_v32  ;;  %v7556_v30 = vld [vmem:[%s9430_s3 + $0x60] ss:$20 sps:$4 sm:$0xff]   ;;  %v7558_v32 = vld [vmem:[%s9430_s3 + $0x88] ss:$20 sps:$4 sm:$0xff]  }
 0x256   :  { %v6869_v34 = vpop.f32.mrb[44].mxu0 }
 0x257   :  { %v6870_v36 = vpop.f32.mrb[45].mxu0 }
 0x258   :  { %v6871_v37 = vadd.f32 %v6870_v36, %v6869_v34  ;;  %v6872_v39 = vpop.f32.mrb[46].mxu0  ;;  %v7560_v34 = vld [vmem:[%s9430_s3 + $0xb0] ss:$20 sps:$4 sm:$0xff]   ;;  %v7562_v36 = vld [vmem:[%s9430_s3 + $0xd8] ss:$20 sps:$4 sm:$0xff]  }
 0x259   :  { %v6891_v35 = vpop.f32.mrb[44].mxu1  ;;  %v6873_v42 = vpop.f32.mrb[47].mxu0 }
 0x25a   :  { %v6892_v38 = vpop.f32.mrb[45].mxu1  ;;  %v4885_v43 = vadd.f32 %v6871_v37, %v4844_v31  ;;  %v6874_v44 = vadd.f32 %v6873_v42, %v6872_v39  ;;  %v7557_v31 = vld [vmem:[%s9430_s3 + $0x1c8] ss:$20 sps:$4 sm:$0xff]   ;;  %v7563_v37 = vld [vmem:[%s9430_s3 + $0x240] ss:$20 sps:$4 sm:$0xff]  }
 0x25b   :  { %v6893_v40 = vadd.f32 %v6892_v38, %v6891_v35  ;;  %v6894_v41 = vpop.f32.mrb[46].mxu1  ;;  %v7561_v35 = vld [vmem:[%s9430_s3 + $0x218] ss:$20 sps:$4 sm:$0xff]   ;;  %v7564_v38 = vld [vmem:[%s9430_s3 + $0x100] ss:$20 sps:$4 sm:$0xff]  }
 0x25c   :  { %v6895_v45 = vpop.f32.mrb[47].mxu1  ;;  %v4888_v48 = vadd.f32 %v6874_v44, %v4847_v33  ;;  %v7559_v33 = vld [vmem:[%s9430_s3 + $0x1f0] ss:$20 sps:$4 sm:$0xff]   ;;  %v7565_v39 = vld [vmem:[%s9430_s3 + $0x268] ss:$20 sps:$4 sm:$0xff]  }
 0x25d   :  { %v6896_v46 = vadd.f32 %v6895_v45, %v6894_v41  ;;  %v4926_v47 = vadd.f32 %v6893_v40, %v4885_v43  ;;  %v7566_v40 = vld [vmem:[%s9430_s3 + $0x128] ss:$20 sps:$4 sm:$0xff]   ;;  %v5202_v41 = vlaneseq  ;;  %v5200_v45 = vld [vmem:[%s9431_s4] sm:$0x1f] }
 0x25f   :  { %v4929_v49 = vadd.f32 %v6896_v46, %v4888_v48  ;;  %v5203_v42 = vshrl.u32 %v5202_v41, 7 }
 0x261   :  { %v5204_v43 = vsub.s32 0, %v5203_v42  ;;  %v5212_v44 = vsub.s32 2, %v5203_v42  ;;  %v5208_v46 = vsub.s32 1, %v5203_v42 }
 0x263   :  { %v5205_v48 = vrot.slane %v5200_v45, %v5204_v43 }
 0x276   :  { %v6913_v50 = vpop.f32.mrb[48].mxu0 }
 0x277   :  { %v6914_v52 = vpop.f32.mrb[49].mxu0 }
 0x278   :  { %v6915_v53 = vadd.f32 %v6914_v52, %v6913_v50  ;;  %v6916_v55 = vpop.f32.mrb[50].mxu0  ;;  %v5209_v50 = vrot.slane %v5200_v45, %v5208_v46 }
 0x279   :  { %v6935_v51 = vpop.f32.mrb[48].mxu1  ;;  %v6917_v58 = vpop.f32.mrb[51].mxu0 }
 0x27a   :  { %v6936_v54 = vpop.f32.mrb[49].mxu1  ;;  %v4967_v59 = vadd.f32 %v6915_v53, %v4926_v47  ;;  %v6918_v60 = vadd.f32 %v6917_v58, %v6916_v55  ;;  %v5216_v47 = vsub.s32 3, %v5203_v42 }
 0x27b   :  { %v6937_v56 = vadd.f32 %v6936_v54, %v6935_v51  ;;  %v6938_v57 = vpop.f32.mrb[50].mxu1 }
 0x27c   :  { %v6939_v61 = vpop.f32.mrb[51].mxu1  ;;  %v4970_v0 = vadd.f32 %v6918_v60, %v4929_v49  ;;  %v5213_v49 = vrot.slane %v5200_v45, %v5212_v44  ;;  %v5217_v51 = vrot.slane %v5200_v45, %v5216_v47 }
 0x27d   :  { %v6940_v62 = vadd.f32 %v6939_v61, %v6938_v57  ;;  %v5008_v63 = vadd.f32 %v6937_v56, %v4967_v59 }
 0x27f   :  { %v5011_v1 = vadd.f32 %v6940_v62, %v4970_v0 }
 0x296   :  { %v6957_v2 = vpop.f32.mrb[52].mxu0 }
 0x297   :  { %v6958_v4 = vpop.f32.mrb[53].mxu0 }
 0x298   :  { %v6959_v6 = vadd.f32 %v6958_v4, %v6957_v2  ;;  %v6960_v8 = vpop.f32.mrb[54].mxu0  ;;  %v5220_v4 = vsub.s32 4, %v5203_v42 }
 0x299   :  { %v6979_v3 = vpop.f32.mrb[52].mxu1  ;;  %v6961_v10 = vpop.f32.mrb[55].mxu0 }
 0x29a   :  { %v6980_v5 = vpop.f32.mrb[53].mxu1  ;;  %v5049_v12 = vadd.f32 %v6959_v6, %v5008_v63  ;;  %v6962_v13 = vadd.f32 %v6961_v10, %v6960_v8  ;;  %v5221_v6 = vrot.slane %v5200_v45, %v5220_v4 }
 0x29b   :  { %v6981_v7 = vadd.f32 %v6980_v5, %v6979_v3  ;;  %v6982_v9 = vpop.f32.mrb[54].mxu1 }
 0x29c   :  { %v6983_v11 = vpop.f32.mrb[55].mxu1  ;;  %v5052_v16 = vadd.f32 %v6962_v13, %v5011_v1 }
 0x29d   :  { %v6984_v14 = vadd.f32 %v6983_v11, %v6982_v9  ;;  %v5090_v15 = vadd.f32 %v6981_v7, %v5049_v12 }
 0x29f   :  { %v5098_v17 = vsub.f32 0.0, %v5090_v15  ;;  %v5093_v18 = vadd.f32 %v6984_v14, %v5052_v16  ;;  %v5096_v19 = vmax.f32 %v5090_v15, 0.0 }
 0x2a1   :  { %v5097_v20 = vmax.f32 %v5093_v18, 0.0  ;;  %v5099_v21 = vsub.f32 0.0, %v5093_v18  ;;  %v5100_v22 = vmax.f32 %v5098_v17, 0.0 }
 0x2a3   :  { %v5101_v23 = vmax.f32 %v5099_v21, 0.0  ;;  %v5102_v24 = vpack.c.bf16 %v5097_v20, %v5096_v19 }
 0x2a5   :  { %v5103_v25 = vpack.c.bf16 %v5101_v23, %v5100_v22 }
 0x2a7   :  { %5675 = vmatprep.mubr.bf16.mxu0 %v5103_v25  ;;  %5718 = vmatprep.mubr.bf16.mxu1 %v5103_v25 }
 0x2a8   :  { %5676 = vmatmul.mubr.bf16.vlgmr.msra.gmra.mrb[56].mxu0 %v5102_v24  ;;  %5719 = vmatmul.mubr.bf16.vlgmr.msra.gmra.mrb[56].mxu1 %v5102_v24 }
 0x2a9   :  { %6986 = vmatpush3.bf16.msra.mxu0 %v7552_v26  ;;  %5761 = vmatprep.mubr.bf16.mxu0 %v5103_v25 }
 0x2aa   :  { %6987 = vmatprep.subr.bf16.mxu0 %v7553_v27 }
 0x2ad   :  { %6988 = vmatpush3.bf16.msra.mxu0 %v7554_v28 }
 0x2ae   :  { %6989 = vmatprep.subr.bf16.mxu0 %v7555_v29 }
 0x2b1   :  { %6990 = vmatpush3.bf16.msra.mxu0 %v7556_v30 }
 0x2b2   :  { %6991 = vmatprep.subr.bf16.mxu0 %v7557_v31 }
 0x2b5   :  { %6992 = vmatpush3.bf16.msra.mxu0 %v7558_v32 }
 0x2b6   :  { %6993 = vmatprep.subr.bf16.mxu0 %v7559_v33 }
 0x2b9   :  { %6994 = vmatpush3.bf16.msra.mxu0 %v7560_v34 }
 0x2ba   :  { %6995 = vmatprep.subr.bf16.mxu0 %v7561_v35 }
 0x2bd   :  { %6996 = vmatpush3.bf16.msra.mxu0 %v7562_v36 }
 0x2be   :  { %6997 = vmatprep.subr.bf16.mxu0 %v7563_v37 }
 0x2c1   :  { %6998 = vmatpush3.bf16.msra.mxu0 %v7564_v38 }
 0x2c2   :  { %6999 = vmatprep.subr.bf16.mxu0 %v7565_v39 }
 0x2c5   :  { %7000 = vmatpush3.bf16.msra.mxu0 %v7566_v40 }
 0x2c8   :  { %5762 = vmatmul.mubr.bf16.vlgmr.msra.gmra.mrb[60].mxu0 %v5102_v24 }
 0x37b   :  { %v5677_v52 = vpop.f32.mrb[56].mxu0  ;;  %v5720_v53 = vpop.f32.mrb[56].mxu1 }
 0x37c   :  { %v5678_v54 = vadd.f32 %v5677_v52, %v5205_v48  ;;  %v5721_v55 = vadd.f32 %v5720_v53, %v5213_v49  ;;  %v5679_v56 = vpop.f32.mrb[57].mxu0  ;;  %v5722_v57 = vpop.f32.mrb[57].mxu1 }
 0x37d   :  { %v5680_v58 = vadd.f32 %v5679_v56, %v5209_v50  ;;  %v5723_v59 = vadd.f32 %v5722_v57, %v5217_v51  ;;  %v5681_v60 = vpop.f32.mrb[58].mxu0  ;;  %v5724_v61 = vpop.f32.mrb[58].mxu1 }
 0x37e   :  { %5770 = vst [vmem:[%s9432_s5] sm:$0xff] %v5678_v54  ;;  %5772 = vst [vmem:[%s9432_s5 + $0x10] sm:$0xff] %v5721_v55  ;;  %v5682_v62 = vadd.f32 %v5681_v60, %v5205_v48  ;;  %v5725_v63 = vadd.f32 %v5724_v61, %v5213_v49  ;;  %v5683_v0 = vpop.f32.mrb[59].mxu0  ;;  %v5726_v1 = vpop.f32.mrb[59].mxu1 }
 0x37f   :  { %5771 = vst [vmem:[%s9432_s5 + $0x8] sm:$0xff] %v5680_v58  ;;  %5773 = vst [vmem:[%s9432_s5 + $0x18] sm:$0xff] %v5723_v59  ;;  %v5684_v2 = vadd.f32 %v5683_v0, %v5209_v50  ;;  %v5727_v3 = vadd.f32 %v5726_v1, %v5217_v51 }
 0x380   :  { %5775 = vst [vmem:[%s9432_s5 + $0x28] sm:$0xff] %v5682_v62  ;;  %5777 = vst [vmem:[%s9432_s5 + $0x38] sm:$0xff] %v5725_v63 }
 0x381   :  { %5776 = vst [vmem:[%s9432_s5 + $0x30] sm:$0xff] %v5684_v2  ;;  %5778 = vst [vmem:[%s9432_s5 + $0x40] sm:$0xff] %v5727_v3 }
 0x39b   :  { %v7001_v5 = vpop.f32.mrb[60].mxu0 }
 0x39c   :  { %v7002_v7 = vpop.f32.mrb[61].mxu0 }
 0x39d   :  { %v7003_v8 = vadd.f32 %v7002_v7, %v7001_v5  ;;  %v7004_v9 = vpop.f32.mrb[62].mxu0 }
 0x39e   :  { %v7005_v10 = vpop.f32.mrb[63].mxu0 }
 0x39f   :  { %v5764_v11 = vadd.f32 %v7003_v8, %v5221_v6  ;;  %v7006_v12 = vadd.f32 %v7005_v10, %v7004_v9 }
 0x3a1   :  { %5774 = vst [vmem:[%s9432_s5 + $0x20] sm:$0xff] %v5764_v11  ;;  %v5767_v13 = vadd.f32 %v7006_v12, %v5221_v6 }
 0x3a3   :  { %5779 = vst [vmem:[%s9432_s5 + $0x48] sm:$0xff] %v5767_v13 }

</bundles_post_ra>
